<compile_context>
chip_gen: v5e
topology: v5e:2x2
jax: 0.10.0
libtpu: 0.0.40
codegen_flags: <defaults>
</compile_context>

<pallas_src>
import functools

import jax
import jax.numpy as jnp
from jax.experimental import pallas as pl
from jax.experimental.pallas import tpu as pltpu

KSIZE = 21
K2 = KSIZE * KSIZE            # 441
K2_PAD = 512                  # lane-aligned K (extra entries produce exp()==0)
HIDDEN = 64
NEG_SLOPE = 0.1
PAD_NEG = -1e30               # exp(PAD_NEG * positive) == 0 in f32 and bf16


def _round_up(x, m):
    return ((x + m - 1) // m) * m


def _leaky(x):
    # == LeakyReLU(0.1) for 0 < slope < 1; mul+max instead of cmp+select+mul
    return jnp.maximum(x, NEG_SLOPE * x)


def _default_exp_dtype():
    """bf16 VPU/EUP exists on v6e/v7x; keep the Gaussian stage f32 elsewhere."""
    try:
        kind = jax.devices()[0].device_kind.lower()
    except Exception:
        return jnp.float32
    if any(tag in kind for tag in ("v6", "v7", "7x")):
        return jnp.bfloat16
    return jnp.float32


def gen_code_kernel(xxyy_ref, sigma_ref, w1t_ref, w2t_ref, w3t_ref, w4t_ref,
                    w5t_ref, out_ref, *, exp_dtype):
    # xxyy_ref : (K2_PAD, 1) f32       sigma_ref: (1, 1, TUV) f32 (lane-dense)
    # w1t      : (64, K2_PAD) bf16     w2t..w4t : (64, 64) bf16
    # w5t      : (COUT_PAD, 64) bf16   out_ref  : (1, COUT_PAD, TUV)
    sig = sigma_ref[0]                                   # (1, TUV) f32
    # exact reciprocal here: it sets the Gaussian bandwidth itself
    inv_2s2 = 1.0 / (2.0 * sig * sig)                    # (1, TUV) f32
    # exponent: (K2_PAD,1) * (1,TUV) -> (K2_PAD, TUV); padded rows -> -huge
    z = xxyy_ref[...] * inv_2s2                          # f32
    k = jnp.exp(z.astype(exp_dtype))                     # bf16 EUP on v6e/v7x
    # row-sum normalization term (f32 accumulation); padded rows contribute 0
    ssum = jnp.sum(k.astype(jnp.float32), axis=0, keepdims=True)   # (1, TUV)
    inv_sum = pl.reciprocal(ssum, approx=True)
    kb = k.astype(jnp.bfloat16)
    # 1x1 convs (bias=False) == matmuls (bf16 in, f32 acc) + LeakyReLU(0.1);
    # the kernel normalization is linear, so it is folded past matmul-1.
    h = _leaky(jnp.dot(w1t_ref[...], kb,
                       preferred_element_type=jnp.float32) * inv_sum)
    h = _leaky(jnp.dot(w2t_ref[...], h.astype(jnp.bfloat16),
                       preferred_element_type=jnp.float32))
    h = _leaky(jnp.dot(w3t_ref[...], h.astype(jnp.bfloat16),
                       preferred_element_type=jnp.float32))
    h = _leaky(jnp.dot(w4t_ref[...], h.astype(jnp.bfloat16),
                       preferred_element_type=jnp.float32))
    code = jnp.dot(w5t_ref[...], h.astype(jnp.bfloat16),
                   preferred_element_type=jnp.float32)   # (COUT_PAD, TUV)
    out_ref[0] = code.astype(out_ref.dtype)


def gen_code_pallas(sigma, weights, *, tn=2048, exp_dtype=None,
                    out_dtype=jnp.bfloat16):
    """sigma: (b, 1, u, v) f32.  weights: dict of (in, out) matmul weights."""
    b, c, u, v = sigma.shape
    assert c == 1, "Gen_Code's rearrange implies a single sigma channel"
    uv = u * v
    cout = weights["w5"].shape[1]
    cout_pad = _round_up(cout, 128)
    if exp_dtype is None:
        exp_dtype = _default_exp_dtype()

    # uv tile (lane axis): multiple of 128, capped at ~uv/2 so there are >=2
    # grid steps along uv whenever uv is large (keeps both TCs busy on v7x).
    t_uv = min(max(128, tn), max(128, _round_up(-(-uv // 2), 128)))
    uv_pad = _round_up(uv, t_uv)
    num_tiles = uv_pad // t_uv

    # constant -(x^2+y^2) column; K padded 441 -> 512 with a huge negative so
    # exp() of padded entries is exactly 0 (drops out of sum and matmul-1).
    ax = jnp.arange(KSIZE, dtype=jnp.float32) - KSIZE // 2
    xx = jnp.tile(ax, (KSIZE, 1))                        # varies along w
    yy = jnp.repeat(ax, KSIZE).reshape(KSIZE, KSIZE)     # varies along h
    xx_yy = (-(xx ** 2 + yy ** 2)).reshape(K2, 1)
    xx_yy = jnp.pad(xx_yy, ((0, K2_PAD - K2), (0, 0)), constant_values=PAD_NEG)

    # sigma: lane-dense (b, 1, uv_pad); padded columns use sigma = 1.0
    sigma_cols = sigma.reshape(b, 1, uv)
    if uv_pad != uv:
        sigma_cols = jnp.pad(sigma_cols, ((0, 0), (0, 0), (0, uv_pad - uv)),
                             constant_values=1.0)

    # Pre-transpose / pad weights once (bf16, f32 accumulation in-kernel).
    w1t = jnp.pad(weights["w1"].T, ((0, 0), (0, K2_PAD - K2))).astype(jnp.bfloat16)
    w2t = weights["w2"].T.astype(jnp.bfloat16)
    w3t = weights["w3"].T.astype(jnp.bfloat16)
    w4t = weights["w4"].T.astype(jnp.bfloat16)
    w5t = jnp.pad(weights["w5"].T,
                  ((0, cout_pad - cout), (0, 0))).astype(jnp.bfloat16)

    n_rows = b * uv_pad
    mm_flops = 2 * (K2_PAD * HIDDEN + 3 * HIDDEN * HIDDEN + HIDDEN * cout_pad)
    weight_bytes = 2 * (K2_PAD * HIDDEN + 3 * HIDDEN * HIDDEN + HIDDEN * cout_pad)
    out_bytes = n_rows * cout_pad * jnp.dtype(out_dtype).itemsize
    cost = pl.CostEstimate(
        flops=n_rows * mm_flops,
        transcendentals=n_rows * K2_PAD,
        bytes_accessed=n_rows * 4 + out_bytes + weight_bytes + 4 * K2_PAD)

    grid_spec = pltpu.PrefetchScalarGridSpec(
        num_scalar_prefetch=0,
        grid=(b, num_tiles),
        in_specs=[
            pl.BlockSpec((K2_PAD, 1), lambda bi, ti: (0, 0)),        # xx_yy col
            pl.BlockSpec((1, 1, t_uv), lambda bi, ti: (bi, 0, ti)),  # sigma
            pl.BlockSpec((HIDDEN, K2_PAD), lambda bi, ti: (0, 0)),   # w1^T
            pl.BlockSpec((HIDDEN, HIDDEN), lambda bi, ti: (0, 0)),   # w2^T
            pl.BlockSpec((HIDDEN, HIDDEN), lambda bi, ti: (0, 0)),   # w3^T
            pl.BlockSpec((HIDDEN, HIDDEN), lambda bi, ti: (0, 0)),   # w4^T
            pl.BlockSpec((cout_pad, HIDDEN), lambda bi, ti: (0, 0)), # w5^T pad
        ],
        out_specs=pl.BlockSpec((1, cout_pad, t_uv),
                               lambda bi, ti: (bi, 0, ti)),
    )

    out_full = pl.pallas_call(
        functools.partial(gen_code_kernel, exp_dtype=exp_dtype),
        out_shape=jax.ShapeDtypeStruct((b, cout_pad, uv_pad), out_dtype),
        grid_spec=grid_spec,
        cost_estimate=cost,
        compiler_params=pltpu.CompilerParams(
            dimension_semantics=("parallel", "parallel"),
            vmem_limit_bytes=40 * 1024 * 1024),
    )(xx_yy, sigma_cols, w1t, w2t, w3t, w4t, w5t)

    # output is already NCHW-ordered: only strip channel/spatial padding.
    return out_full[:, :cout, :uv].reshape(b, cout, u, v)


def gen_code_reference(sigma, weights):
    """Pure-JAX f32 reference mirroring the PyTorch forward."""
    b, c, u, v = sigma.shape
    cout = weights["w5"].shape[1]
    ax = jnp.arange(KSIZE, dtype=jnp.float32) - KSIZE // 2
    xx = jnp.tile(ax, (KSIZE, 1))
    yy = jnp.repeat(ax, KSIZE).reshape(KSIZE, KSIZE)
    xx_yy = -(xx ** 2 + yy ** 2)                       # (21, 21)
    s = sigma.reshape(-1, 1, 1)
    k = jnp.exp(xx_yy[None] / (2.0 * s ** 2))          # (N, 21, 21)
    k = k / jnp.sum(k, axis=(1, 2), keepdims=True)
    k = k.reshape(-1, K2)                              # (N, 441)
    h = k
    for name in ("w1", "w2", "w3", "w4"):
        h = jnp.where(h @ weights[name] >= 0,
                      h @ weights[name], NEG_SLOPE * (h @ weights[name]))
    out = h @ weights["w5"]
    return out.reshape(b, u, v, cout).transpose(0, 3, 1, 2)


def make_weights(key, channel_out):
    """Deterministic synthetic weights. 1x1 conv weight (out,in,1,1) is stored
    transposed as (in, out) so the math is x @ W."""
    ks = jax.random.split(key, 5)
    dims = [(K2, HIDDEN), (HIDDEN, HIDDEN), (HIDDEN, HIDDEN),
            (HIDDEN, HIDDEN), (HIDDEN, channel_out)]
    weights = {}
    for i, (fan_in, fan_out) in enumerate(dims):
        w = jax.random.normal(ks[i], (fan_in, fan_out), jnp.float32)
        weights[f"w{i+1}"] = w / jnp.sqrt(jnp.float32(fan_in))
    return weights


if __name__ == "__main__":
    key = jax.random.PRNGKey(0)
    k_sig, k_w = jax.random.split(key)

    b, c, u, v = 2, 1, 4, 4
    channel_out = 32
    # sigma must be positive (it's a Gaussian std-dev map)
    sigma = jax.random.uniform(k_sig, (b, c, u, v), jnp.float32,
                               minval=0.5, maxval=3.0)
    weights = make_weights(k_w, channel_out)

    out = gen_code_pallas(sigma, weights)
    out = jax.block_until_ready(out)

    ref = gen_code_reference(sigma, weights)
    assert out.shape == (b, channel_out, u, v)
    # bf16 matmuls / bf16 output / approx row-sum reciprocal -> relaxed tol
    err = float(jnp.max(jnp.abs(out.astype(jnp.float32) - ref))
                / (jnp.max(jnp.abs(ref)) + 1e-12))
    assert err < 5e-2, f"mismatch vs reference: normalized max err {err}"

    print("KERNEL_OK")
</pallas_src>

<mosaic_0001>
module attributes {stable_mosaic.version = 11 : i64} {
  func.func @gen_code_kernel(%arg0: i32, %arg1: i32, %arg2: memref<512x1xf32, #tpu.memory_space<vmem>>, %arg3: memref<1x1x128xf32, #tpu.memory_space<vmem>>, %arg4: memref<64x512xbf16, #tpu.memory_space<vmem>>, %arg5: memref<64x64xbf16, #tpu.memory_space<vmem>>, %arg6: memref<64x64xbf16, #tpu.memory_space<vmem>>, %arg7: memref<64x64xbf16, #tpu.memory_space<vmem>>, %arg8: memref<128x64xbf16, #tpu.memory_space<vmem>>, %arg9: memref<1x128x128xbf16, #tpu.memory_space<vmem>>) attributes {dimension_semantics = [#tpu.dimension_semantics<parallel>, #tpu.dimension_semantics<parallel>], iteration_bounds = array<i64: 2, 1>, scalar_prefetch = 0 : i64, scratch_operands = 0 : i64, tpu.core_type = #tpu.core_type<tc>, window_params = [{pipeline_mode = #tpu.pipeline_mode<synchronous>, transform_indices = @transform_0, window_bounds = array<i64: 512, 1>}, {transform_indices = @transform_1, window_bounds = array<i64: 1, 1, 128>}, {pipeline_mode = #tpu.pipeline_mode<synchronous>, transform_indices = @transform_2, window_bounds = array<i64: 64, 512>}, {pipeline_mode = #tpu.pipeline_mode<synchronous>, transform_indices = @transform_3, window_bounds = array<i64: 64, 64>}, {pipeline_mode = #tpu.pipeline_mode<synchronous>, transform_indices = @transform_4, window_bounds = array<i64: 64, 64>}, {pipeline_mode = #tpu.pipeline_mode<synchronous>, transform_indices = @transform_5, window_bounds = array<i64: 64, 64>}, {pipeline_mode = #tpu.pipeline_mode<synchronous>, transform_indices = @transform_6, window_bounds = array<i64: 128, 64>}, {transform_indices = @transform_7, window_bounds = array<i64: 1, 128, 128>}]} {
    %c0 = arith.constant 0 : index
    %c0_0 = arith.constant 0 : index
    %c0_1 = arith.constant 0 : index
    %0 = vector.load %arg3[%c0, %c0_0, %c0_1] : memref<1x1x128xf32, #tpu.memory_space<vmem>>, vector<1x1x128xf32>
    %1 = vector.shape_cast %0 : vector<1x1x128xf32> to vector<1x128xf32>
    %cst = arith.constant 2.000000e+00 : f32
    %2 = vector.broadcast %cst : f32 to vector<1x128xf32>
    %3 = arith.mulf %2, %1 : vector<1x128xf32>
    %4 = arith.mulf %3, %1 : vector<1x128xf32>
    %cst_2 = arith.constant 1.000000e+00 : f32
    %5 = vector.broadcast %cst_2 : f32 to vector<1x128xf32>
    %6 = arith.divf %5, %4 : vector<1x128xf32>
    %c0_3 = arith.constant 0 : index
    %c0_4 = arith.constant 0 : index
    %7 = vector.load %arg2[%c0_3, %c0_4] : memref<512x1xf32, #tpu.memory_space<vmem>>, vector<512x1xf32>
    %8 = vector.broadcast %7 : vector<512x1xf32> to vector<512x128xf32>
    %9 = vector.broadcast %6 : vector<1x128xf32> to vector<512x128xf32>
    %10 = arith.mulf %8, %9 : vector<512x128xf32>
    %11 = math.exp %10 : vector<512x128xf32>
    %cst_5 = arith.constant dense<0.000000e+00> : vector<128xf32>
    %12 = vector.multi_reduction <add>, %11, %cst_5 [0] : vector<512x128xf32> to vector<128xf32>
    %13 = vector.shape_cast %12 : vector<128xf32> to vector<1x128xf32>
    %14 = tpu.reciprocal %13 {approx = true} : vector<1x128xf32> -> vector<1x128xf32>
    %15 = arith.truncf %11 : vector<512x128xf32> to vector<512x128xbf16>
    %c0_6 = arith.constant 0 : index
    %c0_7 = arith.constant 0 : index
    %16 = vector.load %arg4[%c0_6, %c0_7] : memref<64x512xbf16, #tpu.memory_space<vmem>>, vector<64x512xbf16>
    %cst_8 = arith.constant dense<0.000000e+00> : vector<64x128xf32>
    %17 = tpu.matmul %16, %15, %cst_8 {dimension_numbers = #tpu.dot_dimension_numbers<[1], [0], [0], [1], [0, 0, 1, 1], [], []>} : vector<64x512xbf16>, vector<512x128xbf16>, vector<64x128xf32> -> vector<64x128xf32>
    %18 = vector.broadcast %14 : vector<1x128xf32> to vector<64x128xf32>
    %19 = arith.mulf %17, %18 : vector<64x128xf32>
    %cst_9 = arith.constant 1.000000e-01 : f32
    %20 = vector.broadcast %cst_9 : f32 to vector<64x128xf32>
    %21 = arith.mulf %20, %19 : vector<64x128xf32>
    %22 = arith.maximumf %19, %21 : vector<64x128xf32>
    %c0_10 = arith.constant 0 : index
    %c0_11 = arith.constant 0 : index
    %23 = vector.load %arg5[%c0_10, %c0_11] : memref<64x64xbf16, #tpu.memory_space<vmem>>, vector<64x64xbf16>
    %24 = arith.truncf %22 : vector<64x128xf32> to vector<64x128xbf16>
    %cst_12 = arith.constant dense<0.000000e+00> : vector<64x128xf32>
    %25 = tpu.matmul %23, %24, %cst_12 {dimension_numbers = #tpu.dot_dimension_numbers<[1], [0], [0], [1], [0, 0, 1, 1], [], []>} : vector<64x64xbf16>, vector<64x128xbf16>, vector<64x128xf32> -> vector<64x128xf32>
    %cst_13 = arith.constant 1.000000e-01 : f32
    %26 = vector.broadcast %cst_13 : f32 to vector<64x128xf32>
    %27 = arith.mulf %26, %25 : vector<64x128xf32>
    %28 = arith.maximumf %25, %27 : vector<64x128xf32>
    %c0_14 = arith.constant 0 : index
    %c0_15 = arith.constant 0 : index
    %29 = vector.load %arg6[%c0_14, %c0_15] : memref<64x64xbf16, #tpu.memory_space<vmem>>, vector<64x64xbf16>
    %30 = arith.truncf %28 : vector<64x128xf32> to vector<64x128xbf16>
    %cst_16 = arith.constant dense<0.000000e+00> : vector<64x128xf32>
    %31 = tpu.matmul %29, %30, %cst_16 {dimension_numbers = #tpu.dot_dimension_numbers<[1], [0], [0], [1], [0, 0, 1, 1], [], []>} : vector<64x64xbf16>, vector<64x128xbf16>, vector<64x128xf32> -> vector<64x128xf32>
    %cst_17 = arith.constant 1.000000e-01 : f32
    %32 = vector.broadcast %cst_17 : f32 to vector<64x128xf32>
    %33 = arith.mulf %32, %31 : vector<64x128xf32>
    %34 = arith.maximumf %31, %33 : vector<64x128xf32>
    %c0_18 = arith.constant 0 : index
    %c0_19 = arith.constant 0 : index
    %35 = vector.load %arg7[%c0_18, %c0_19] : memref<64x64xbf16, #tpu.memory_space<vmem>>, vector<64x64xbf16>
    %36 = arith.truncf %34 : vector<64x128xf32> to vector<64x128xbf16>
    %cst_20 = arith.constant dense<0.000000e+00> : vector<64x128xf32>
    %37 = tpu.matmul %35, %36, %cst_20 {dimension_numbers = #tpu.dot_dimension_numbers<[1], [0], [0], [1], [0, 0, 1, 1], [], []>} : vector<64x64xbf16>, vector<64x128xbf16>, vector<64x128xf32> -> vector<64x128xf32>
    %cst_21 = arith.constant 1.000000e-01 : f32
    %38 = vector.broadcast %cst_21 : f32 to vector<64x128xf32>
    %39 = arith.mulf %38, %37 : vector<64x128xf32>
    %40 = arith.maximumf %37, %39 : vector<64x128xf32>
    %c0_22 = arith.constant 0 : index
    %c0_23 = arith.constant 0 : index
    %41 = vector.load %arg8[%c0_22, %c0_23] : memref<128x64xbf16, #tpu.memory_space<vmem>>, vector<128x64xbf16>
    %42 = arith.truncf %40 : vector<64x128xf32> to vector<64x128xbf16>
    %cst_24 = arith.constant dense<0.000000e+00> : vector<128x128xf32>
    %43 = tpu.matmul %41, %42, %cst_24 {dimension_numbers = #tpu.dot_dimension_numbers<[1], [0], [0], [1], [0, 0, 1, 1], [], []>} : vector<128x64xbf16>, vector<64x128xbf16>, vector<128x128xf32> -> vector<128x128xf32>
    %44 = arith.truncf %43 : vector<128x128xf32> to vector<128x128xbf16>
    %c0_25 = arith.constant 0 : index
    %c0_26 = arith.constant 0 : index
    %c0_27 = arith.constant 0 : index
    %45 = vector.load %arg9[%c0_25, %c0_26, %c0_27] : memref<1x128x128xbf16, #tpu.memory_space<vmem>>, vector<1x128x128xbf16>
    %46 = vector.shape_cast %45 : vector<1x128x128xbf16> to vector<128x128xbf16>
    %47 = vector.shape_cast %44 : vector<128x128xbf16> to vector<1x128x128xbf16>
    tpu.vector_store %arg9[%c0_25, %c0_26, %c0_27], %47 {strides = array<i32>} : memref<1x128x128xbf16, #tpu.memory_space<vmem>>, vector<1x128x128xbf16>,
    return
  }
  func.func @transform_0(%arg0: i32, %arg1: i32) -> (i32, i32) {
    %c0_i32 = arith.constant 0 : i32
    %c0_i32_0 = arith.constant 0 : i32
    %c0_i32_1 = arith.constant 0 : i32
    return %c0_i32, %c0_i32_0 : i32, i32
  }
  func.func @transform_1(%arg0: i32, %arg1: i32) -> (i32, i32, i32) {
    %c0_i32 = arith.constant 0 : i32
    %c0_i32_0 = arith.constant 0 : i32
    return %arg0, %c0_i32, %arg1 : i32, i32, i32
  }
  func.func @transform_2(%arg0: i32, %arg1: i32) -> (i32, i32) {
    %c0_i32 = arith.constant 0 : i32
    %c0_i32_0 = arith.constant 0 : i32
    %c0_i32_1 = arith.constant 0 : i32
    return %c0_i32, %c0_i32_0 : i32, i32
  }
  func.func @transform_3(%arg0: i32, %arg1: i32) -> (i32, i32) {
    %c0_i32 = arith.constant 0 : i32
    %c0_i32_0 = arith.constant 0 : i32
    %c0_i32_1 = arith.constant 0 : i32
    return %c0_i32, %c0_i32_0 : i32, i32
  }
  func.func @transform_4(%arg0: i32, %arg1: i32) -> (i32, i32) {
    %c0_i32 = arith.constant 0 : i32
    %c0_i32_0 = arith.constant 0 : i32
    %c0_i32_1 = arith.constant 0 : i32
    return %c0_i32, %c0_i32_0 : i32, i32
  }
  func.func @transform_5(%arg0: i32, %arg1: i32) -> (i32, i32) {
    %c0_i32 = arith.constant 0 : i32
    %c0_i32_0 = arith.constant 0 : i32
    %c0_i32_1 = arith.constant 0 : i32
    return %c0_i32, %c0_i32_0 : i32, i32
  }
  func.func @transform_6(%arg0: i32, %arg1: i32) -> (i32, i32) {
    %c0_i32 = arith.constant 0 : i32
    %c0_i32_0 = arith.constant 0 : i32
    %c0_i32_1 = arith.constant 0 : i32
    return %c0_i32, %c0_i32_0 : i32, i32
  }
  func.func @transform_7(%arg0: i32, %arg1: i32) -> (i32, i32, i32) {
    %c0_i32 = arith.constant 0 : i32
    %c0_i32_0 = arith.constant 0 : i32
    return %arg0, %c0_i32, %arg1 : i32, i32, i32
  }
}

</mosaic_0001>

<bundles_post_ra>
// kernel: tpu_custom_call.1
= control target key start
LH: loop header
LB: loop body
LE: loop exit
PB: predicated region body
PF: predicated region fallthrough
CT: control target
= control target key end

     0   :  { %12 = vsyncpa [#allocation3], 0  ;;  %s3134_s0 = inlined_call_operand.vmem [shape: f32[512,1], index: 0, kind: input, shape index: {}]   ;;  %s3135_s1 = inlined_call_operand.vmem [shape: f32[2,1,128], index: 1, kind: input, shape index: {}]   ;;  %s3136_s2 = inlined_call_operand.vmem [shape: bf16[64,512], index: 2, kind: input, shape index: {}]   ;;  %s3137_s3 = inlined_call_operand.vmem [shape: bf16[64,64], index: 3, kind: input, shape index: {}]   ;;  %s3138_s4 = inlined_call_operand.vmem [shape: bf16[64,64], index: 4, kind: input, shape index: {}]   ;;  %s3139_s5 = inlined_call_operand.vmem [shape: bf16[64,64], index: 5, kind: input, shape index: {}]   ;;  %s3140_s6 = inlined_call_operand.vmem [shape: bf16[128,64], index: 6, kind: input, shape index: {}]   ;;  %s3141_s7 = inlined_call_operand.hbm [shape: bf16[2,128,128], index: 7, kind: output, shape index: {}]  }
   0x1   :  { %14 = vsyncpa [#allocation3 + $0x1], 0  ;;  %s2349_s24 = smov 0   ;;  %s2351_s25 = smov 0  }
   0x2   :  { %s2353_s26 = smov 0   ;;  %s2355_s27 = smov 0  }
   0x3   :  { %s2357_s28 = smov 0   ;;  %s2359_s29 = smov 0  }
   0x4 LB: > { %s1754_s30 = sadd.s32 4294967295, %s2304_s29   ;;  %s1755_s8 = sadd.s32 4294967294, %s2304_s29   ;;  %s2304_s29 = sphi %s2359_s29, %s20_s29   ;;  %s2300_s28 = sphi %s2357_s28, %s3148_s28   ;;  %s2296_s27 = sphi %s2355_s27, %s3147_s27   ;;  %s2292_s26 = sphi %s2353_s26, %s3146_s26   ;;  %s2288_s25 = sphi %s2351_s25, %s3145_s25   ;;  %s2284_s24 = sphi %s2349_s24, %s3144_s24  }
   0x5   : > { %s32_s9 = sadd.s32 1, %s2300_s28  ;;  %s195_s10 = sadd.s32 1, %s2292_s26 }
   0x6   : > { %p34_p0 = scmp.ge.s32.totalorder %s32_s9, 2  ;;  %p205_p1 = scmp.ne.s32.totalorder %s2292_s26, %s2288_s25 }
   0x7   : > { %p206_p2 = scmp.eq.s32.totalorder %s1754_s30, 1  ;;  %p211_p3 = scmp.ne.s32.totalorder %s2288_s25, %s2284_s24 }
   0x8   : > { %s3150_s9 = smov (%p34_p0, %s32_s9), 0  ;;  %p212_p5 = scmp.eq.s32.totalorder %s1755_s8, 1 }
   0x9   : > { %p2389_p4 = por %p206_p2, %p205_p1  ;;  %s190_s12 = ssub.s32 %s2300_s28, %s3150_s9 }
   0xa   : > { %p1758_p6 = scmp.ge.s32.totalorder %s2304_s29, 1  ;;  %p193_p7 = scmp.eq.s32.totalorder %s190_s12, 0 }
   0xb   : > { %p2396_p8 = por %p212_p5, %p211_p3  ;;  %p257_p9 = scmp.lt.s32.totalorder %s2304_s29, 3 }
   0xc   : > { %s2402_s14 = scalar_select %p193_p7, %s2292_s26, %s195_s10  }
   0xd   : > { %p258_p10 = pnand %p1758_p6, %p257_p9 }
   0xe   : > { %p290_p11 = scmp.lt.s32.totalorder (!%p258_p10), %s2296_s27, 1  ;;  %s287_s18 = sand.u32 (!%p258_p10), 1, %s2288_s25  }
   0xf   : > { %261 = sbr.rel (%p258_p10) target bundleno = 1362 (0x552), region = 48  ;;  %s1759_s19 = sshll.u32 (!%p258_p10), %s287_s18, 6 }
  0x10   : > { %s3085_s20 = scalar_lea.vmem (!%p258_p10), [#allocation2], %s1759_s19  ;;  %s2246_s19 = scalar_lea.hbm (!%p258_p10), %s3141_s7, 128 }
  0x11   : > { %s1679_s30 = sshll.u32 (!%p258_p10), %s3085_s20, 4  ;;  %s1680_s30 = int_to_ptr.vmem [resolvable:$true] %s1679_s30 }
  0x14   : > { %v329_v0 = vld [vmem:[%s3134_s0 + $0x70] sm:$0xff]  ;;  %v327_v1 = vld [vmem:[%s3134_s0 + $0x60] sm:$0xff]  ;;  %v2306_v3 = vmov 0   ;;  %v328_v4 = vld [vmem:[%s3134_s0 + $0x68] sm:$0xff]  ;;  %s291_s17 = scalar_select %p290_p11, %s2296_s27, 1  ;;  %vm1264_vm4 = vcmask 523264  }
  0x15   : > { %v325_v2 = vld [vmem:[%s3134_s0 + $0x50] sm:$0xff]  ;;  %2093 = vset.pattern.permute.xlu2 %v2306_v3  ;;  %2092 = vset.pattern.permute.xlu1 %v2306_v3  ;;  %v330_v5 = vld [vmem:[%s3134_s0 + $0x78] sm:$0xff]  ;;  %v324_v7 = vld [vmem:[%s3134_s0 + $0x48] sm:$0xff] }
  0x16   : > { %2091 = vset.pattern.permute.xlu0 %v2306_v3  ;;  %441 = vperm.xlu1 %2092, %v327_v1   ;;  %v326_v6 = vld [vmem:[%s3134_s0 + $0x58] sm:$0xff]  ;;  %v323_v8 = vld [vmem:[%s3134_s0 + $0x40] sm:$0xff]  ;;  %v321_v9 = vld [vmem:[%s3134_s0 + $0x30] sm:$0xff]  ;;  %s295_s10 = scalar_lea.vmem %s3135_s1, %s291_s17  ;;  %s1965_s17 = sshll.u32 %s2296_s27, 6 }
  0x17   : > { %451 = vperm.xlu0 %2091, %v329_v0   ;;  %431 = vperm.xlu2 %2093, %v325_v2   ;;  %v319_v10 = vld [vmem:[%s3134_s0 + $0x20] sm:$0xff]  ;;  %v322_v11 = vld [vmem:[%s3134_s0 + $0x38] sm:$0xff]  ;;  %v320_v12 = vld [vmem:[%s3134_s0 + $0x28] sm:$0xff]  ;;  %s1678_s23 = scalar_lea.hbm %s3141_s7, %s1965_s17 }
  0x18   : > { %v318_v13 = vld [vmem:[%s3134_s0 + $0x18] sm:$0xff]  ;;  %v317_v14 = vld [vmem:[%s3134_s0 + $0x10] sm:$0xff]  ;;  %v315_v15 = vld [vmem:[%s3134_s0] sm:$0xff]  ;;  %s1681_s8 = sshll.u32 %s1678_s23, 4  ;;  %s1682_s8 = int_to_ptr.hbm [resolvable:$true] %s1681_s8 }
  0x19   : > { %v361_v16 = vld [vmem:[%s3134_s0 + $0x170] sm:$0xff]  ;;  %v316_v17 = vld [vmem:[%s3134_s0 + $0x8] sm:$0xff]  ;;  %v362_v18 = vld [vmem:[%s3134_s0 + $0x178] sm:$0xff]  ;;  %s2240_s12 = sshra.s32 %s1682_s8, 4  ;;  %s2241_s12 = int_to_ptr.hbm [resolvable:$true] %s2240_s12 }
  0x1a   : > { %v346_v19 = vld [vmem:[%s3134_s0 + $0xf8] sm:$0xff]  ;;  %v345_v20 = vld [vmem:[%s3134_s0 + $0xf0] sm:$0xff]  ;;  %v359_v21 = vld [vmem:[%s3134_s0 + $0x160] sm:$0xff]  ;;  %s2242_s15 = scalar_lea.hbm %s2241_s12, 64  ;;  %p2247_p1 = scmp.lt.s32.totalorder %s2241_s12, %s3141_s7 }
  0x1b   : > { %v343_v22 = vld [vmem:[%s3134_s0 + $0xe0] sm:$0xff]  ;;  %v360_v23 = vld [vmem:[%s3134_s0 + $0x168] sm:$0xff]  ;;  %v358_v25 = vld [vmem:[%s3134_s0 + $0x158] sm:$0xff]  ;;  %p2243_p12 = scmp.ne.s32.totalorder %s2241_s12, %s2242_s15  ;;  %p2248_p2 = scmp.lt.s32.totalorder %s2246_s19, %s2242_s15 }
  0x1c   : > { %v344_v24 = vld [vmem:[%s3134_s0 + $0xe8] sm:$0xff]  ;;  %v357_v26 = vld [vmem:[%s3134_s0 + $0x150] sm:$0xff]  ;;  %v355_v28 = vld [vmem:[%s3134_s0 + $0x140] sm:$0xff] }
  0x1d   : > { %v341_v27 = vld [vmem:[%s3134_s0 + $0xd0] sm:$0xff]  ;;  %v342_v29 = vld [vmem:[%s3134_s0 + $0xd8] sm:$0xff]  ;;  %v356_v30 = vld [vmem:[%s3134_s0 + $0x148] sm:$0xff]  ;;  %p2244_p13 = pnand %p2243_p12, %p2389_p4  ;;  %p2249_p3 = por %p2248_p2, %p2247_p1 }
  0x1e   : > { %446 = vperm.xlu1 %2092, %v328_v4   ;;  %v297_v31 = vld [vmem:[%s295_s10] sm:$0x1]  ;;  %v340_v33 = vld [vmem:[%s3134_s0 + $0xc8] sm:$0xff]  ;;  %v353_v35 = vld [vmem:[%s3134_s0 + $0x130] sm:$0xff]  ;;  %s1666_s10 = scalar_lea.sflag [#allocation3], %s287_s18 }
  0x1f   : > { %456 = vperm.xlu0 %2091, %v330_v5   ;;  %436 = vperm.xlu2 %2093, %v326_v6   ;;  %v298_v32 = vmul.f32 2.0, %v297_v31  ;;  %v339_v34 = vld [vmem:[%s3134_s0 + $0xc0] sm:$0xff]  ;;  %v337_v37 = vld [vmem:[%s3134_s0 + $0xb0] sm:$0xff]  ;;  %v354_v38 = vld [vmem:[%s3134_s0 + $0x138] sm:$0xff]  ;;  %p2245_p0 = pneg %p2244_p13 }
  0x20   : > { %v338_v39 = vld [vmem:[%s3134_s0 + $0xb8] sm:$0xff]  ;;  %v352_v43 = vld [vmem:[%s3134_s0 + $0x128] sm:$0xff]  ;;  %v351_v44 = vld [vmem:[%s3134_s0 + $0x120] sm:$0xff] }
  0x21   : > { %v299_v36 = vmul.f32 %v298_v32, %v297_v31  ;;  %v335_v45 = vld [vmem:[%s3134_s0 + $0xa0] sm:$0xff]  ;;  %v349_v49 = vld [vmem:[%s3134_s0 + $0x110] sm:$0xff]  ;;  %v336_v50 = vld [vmem:[%s3134_s0 + $0xa8] sm:$0xff]  ;;  %p2250_p5 = pnand %p2249_p3, %p2245_p0 }
  0x22   : > { %v350_v51 = vld [vmem:[%s3134_s0 + $0x118] sm:$0xff]  ;;  %v333_v59 = vld [vmem:[%s3134_s0 + $0x90] sm:$0xff]  ;;  %v347_v60 = vld [vmem:[%s3134_s0 + $0x100] sm:$0xff] }
  0x23   : > { %2094 = vrcp.f32 %v299_v36  ;;  %vm305_vm0 = vweird.f32 %v299_v36  ;;  %v311_v52 = vand.u32 2147483648, %v299_v36  ;;  %v309_v54 = vand.u32 2147483647, %v299_v36  ;;  %v334_v58 = vld [vmem:[%s3134_s0 + $0x98] sm:$0xff]  ;;  %v377_v2 = vld [vmem:[%s3134_s0 + $0x1f0] sm:$0xff]  ;;  %v348_v3 = vld [vmem:[%s3134_s0 + $0x108] sm:$0xff] }
  0x24   : > { %v378_v4 = vld [vmem:[%s3134_s0 + $0x1f8] sm:$0xff]  ;;  %v376_v32 = vld [vmem:[%s3134_s0 + $0x1e8] sm:$0xff] }
  0x25   : > { %v312_v56 = vor.u32 1.1754944e-38, %v311_v52  ;;  %vm310_vm3 = vcmp.eq.f32.partialorder %v309_v54, 8.507059e+37  ;;  %v369_v52 = vld [vmem:[%s3134_s0 + $0x1b0] sm:$0xff] }
  0x26   : > { %426 = vperm.xlu1 %2092, %v324_v7  }
  0x27   : > { %421 = vperm.xlu0 %2091, %v323_v8   ;;  %411 = vperm.xlu2 %2093, %v321_v9  }
  0x29   : > { %v2095_v40 = vpop.eup %2094 }
  0x2a   : > { %v301_v42 = vmul.f32 %v2095_v40, %v299_v36  ;;  %vm306_vm1 = vweird.f32 %v2095_v40 }
  0x2b   : > { %vm307_vm2 = vmor %vm305_vm0, %vm306_vm1 }
  0x2c   : > { %v302_v46 = vsub.f32 1.0, %v301_v42 }
  0x2e   : > { %401 = vperm.xlu1 %2092, %v319_v10   ;;  %v303_v48 = vmul.f32 %v2095_v40, %v302_v46 }
  0x2f   : > { %416 = vperm.xlu0 %2091, %v322_v11   ;;  %406 = vperm.xlu2 %2093, %v320_v12  }
  0x30   : > { %v304_v53 = vadd.f32 %v2095_v40, %v303_v48 }
  0x32   : > { %v308_v57 = vsel %vm307_vm2, %v2095_v40, %v304_v53 }
  0x33   : > { %v313_v61 = vsel %vm310_vm3, %v312_v56, %v308_v57 }
  0x34   : > { %v2544_v63 = vperm.slane %v313_v61, 0 }
  0x36   : > { %396 = vperm.xlu1 %2092, %v318_v13   ;;  %v332_v13 = vld [vmem:[%s3134_s0 + $0x88] sm:$0xff] }
  0x37   : > { %391 = vperm.xlu0 %2091, %v317_v14   ;;  %381 = vperm.xlu2 %2093, %v315_v15  }
  0x3e   : > { %611 = vperm.xlu1 %2092, %v361_v16   ;;  %v331_v16 = vld [vmem:[%s3134_s0 + $0x80] sm:$0xff] }
  0x3f   : > { %386 = vperm.xlu0 %2091, %v316_v17   ;;  %616 = vperm.xlu2 %2093, %v362_v18   ;;  %v375_v17 = vld [vmem:[%s3134_s0 + $0x1e0] sm:$0xff] }
  0x46   : > { %536 = vperm.xlu1 %2092, %v346_v19  }
  0x47   : > { %531 = vperm.xlu0 %2091, %v345_v20   ;;  %601 = vperm.xlu2 %2093, %v359_v21  }
  0x4e   : > { %521 = vperm.xlu1 %2092, %v343_v22  }
  0x4f   : > { %606 = vperm.xlu0 %2091, %v360_v23   ;;  %526 = vperm.xlu2 %2093, %v344_v24  }
  0x56   : > { %596 = vperm.xlu1 %2092, %v358_v25  }
  0x57   : > { %591 = vperm.xlu0 %2091, %v357_v26   ;;  %511 = vperm.xlu2 %2093, %v341_v27  }
  0x5e   : > { %581 = vperm.xlu1 %2092, %v355_v28  }
  0x5f   : > { %516 = vperm.xlu0 %2091, %v342_v29   ;;  %586 = vperm.xlu2 %2093, %v356_v30   ;;  %v373_v29 = vld [vmem:[%s3134_s0 + $0x1d0] sm:$0xff] }
  0x66   : > { %506 = vperm.xlu1 %2092, %v340_v33   ;;  %v374_v33 = vld [vmem:[%s3134_s0 + $0x1d8] sm:$0xff] }
  0x67   : > { %501 = vperm.xlu0 %2091, %v339_v34   ;;  %571 = vperm.xlu2 %2093, %v353_v35  }
  0x6e   : > { %491 = vperm.xlu1 %2092, %v337_v37  }
  0x6f   : > { %576 = vperm.xlu0 %2091, %v354_v38   ;;  %496 = vperm.xlu2 %2093, %v338_v39  }
  0x71   : > { %v432_v41 = vpop.permute.xlu2 %431 }
  0x72   : > { %v712_v14 = vmul.f32 %v2544_v63, %v432_v41 }
  0x74   : > { %v786_v21 = vmul.f32 1.442695, %v712_v14 }
  0x76   : > { %566 = vperm.xlu1 %2092, %v352_v43  }
  0x77   : > { %561 = vperm.xlu0 %2091, %v351_v44   ;;  %481 = vperm.xlu2 %2093, %v335_v45  }
  0x79   : > { %v437_v47 = vpop.permute.xlu2 %436 }
  0x7a   : > { %v713_v18 = vmul.f32 %v2544_v63, %v437_v47 }
  0x7c   : > { %v788_v23 = vmul.f32 1.442695, %v713_v18 }
  0x7e   : > { %551 = vperm.xlu1 %2092, %v349_v49   ;;  %v372_v49 = vld [vmem:[%s3134_s0 + $0x1c8] sm:$0xff] }
  0x7f   : > { %486 = vperm.xlu0 %2091, %v336_v50   ;;  %556 = vperm.xlu2 %2093, %v350_v51   ;;  %v371_v51 = vld [vmem:[%s3134_s0 + $0x1c0] sm:$0xff] }
  0x81   : > { %v412_v55 = vpop.permute.xlu2 %411 }
  0x82   : > { %v708_v34 = vmul.f32 %v2544_v63, %v412_v55 }
  0x84   : > { %v778_v40 = vmul.f32 1.442695, %v708_v34 }
  0x86   : > { %476 = vperm.xlu1 %2092, %v334_v58  }
  0x87   : > { %471 = vperm.xlu0 %2091, %v333_v59   ;;  %541 = vperm.xlu2 %2093, %v347_v60  }
  0x88   : > { %v442_v62 = vpop.permute.xlu1 %441 }
  0x89   : > { %v452_v0 = vpop.permute.xlu0 %451  ;;  %v2546_v1 = vpop.permute.xlu2 %406  ;;  %v714_v12 = vmul.f32 %v2544_v63, %v442_v62 }
  0x8a   : > { %v716_v5 = vmul.f32 %v2544_v63, %v452_v0  ;;  %v707_v48 = vmul.f32 %v2544_v63, %v2546_v1 }
  0x8b   : > { %v790_v20 = vmul.f32 1.442695, %v714_v12 }
  0x8c   : > { %v794_v7 = vmul.f32 1.442695, %v716_v5  ;;  %v776_v57 = vmul.f32 1.442695, %v707_v48 }
  0x8e   : > { %691 = vperm.xlu1 %2092, %v377_v2   ;;  %2096 = vpow2.f32 %v794_v7 }
  0x8f   : > { %546 = vperm.xlu0 %2091, %v348_v3   ;;  %696 = vperm.xlu2 %2093, %v378_v4   ;;  %v367_v4 = vld [vmem:[%s3134_s0 + $0x1a0] sm:$0xff] }
  0x90   : > { %v447_v6 = vpop.permute.xlu1 %446 }
  0x91   : > { %v457_v8 = vpop.permute.xlu0 %456  ;;  %v715_v9 = vmul.f32 %v2544_v63, %v447_v6  ;;  %v2559_v10 = vpop.permute.xlu2 %381 }
  0x92   : > { %v717_v11 = vmul.f32 %v2544_v63, %v457_v8  ;;  %v702_v2 = vmul.f32 %v2544_v63, %v2559_v10  ;;  %v370_v8 = vld [vmem:[%s3134_s0 + $0x1b8] sm:$0xff] }
  0x93   : > { %v792_v19 = vmul.f32 1.442695, %v715_v9  ;;  %v368_v9 = vld [vmem:[%s3134_s0 + $0x1a8] sm:$0xff] }
  0x94   : > { %v796_v15 = vmul.f32 1.442695, %v717_v11  ;;  %v2578_v28 = vpop.eup %2096  ;;  %v766_v12 = vmul.f32 1.442695, %v702_v2 }
  0x96   : > { %2098 = vpow2.f32 %v796_v15  ;;  %466 = vperm.xlu1 %2092, %v332_v13  }
  0x97   : > { %461 = vperm.xlu0 %2091, %v331_v16   ;;  %681 = vperm.xlu2 %2093, %v375_v17   ;;  %2100 = vpow2.f32 %v792_v19 }
  0x98   : > { %v427_v22 = vpop.permute.xlu1 %426  ;;  %2102 = vpow2.f32 %v790_v20 }
  0x99   : > { %v711_v24 = vmul.f32 %v2544_v63, %v427_v22  ;;  %v422_v25 = vpop.permute.xlu0 %421  ;;  %v2575_v26 = vpop.permute.xlu2 %616  ;;  %2104 = vpow2.f32 %v786_v21 }
  0x9a   : > { %v710_v27 = vmul.f32 %v2544_v63, %v422_v25  ;;  %2106 = vpow2.f32 %v788_v23  ;;  %v749_v6 = vmul.f32 %v2544_v63, %v2575_v26  ;;  %v366_v23 = vld [vmem:[%s3134_s0 + $0x198] sm:$0xff]  ;;  %v365_v26 = vld [vmem:[%s3134_s0 + $0x190] sm:$0xff] }
  0x9b   : > { %v784_v31 = vmul.f32 1.442695, %v711_v24 }
  0x9c   : > { %v2583_v30 = vpop.eup %2098  ;;  %v782_v35 = vmul.f32 1.442695, %v710_v27  ;;  %v860_v13 = vmul.f32 1.442695, %v749_v6  ;;  %v363_v27 = vld [vmem:[%s3134_s0 + $0x180] sm:$0xff] }
  0x9d   : > { %v971_v36 = vpack.c.bf16 %v2583_v30, %v2578_v28  ;;  %v2594_v37 = vpop.eup %2100  ;;  %2108 = vpow2.f32 %v784_v31 }
  0x9e   : > { %671 = vperm.xlu1 %2092, %v373_v29   ;;  %v2596_v39 = vpop.eup %2102  ;;  %2110 = vpow2.f32 %v782_v35 }
  0x9f   : > { %686 = vperm.xlu0 %2091, %v376_v32   ;;  %676 = vperm.xlu2 %2093, %v374_v33   ;;  %v2601_v44 = vpop.eup %2104  ;;  %v970_v46 = vpack.c.bf16 %v2594_v37, %v2596_v39  ;;  %2112 = vpow2.f32 %v778_v40 }
  0xa0   : > { %1092 = vmatpush.bf16.msra.mxu0 %v971_v36  ;;  %2013 = vmatpush.bf16.msra.mxu1 %v971_v36  ;;  %v402_v38 = vpop.permute.xlu1 %401  ;;  %v2606_v47 = vpop.eup %2106 }
  0xa1   : > { %v417_v41 = vpop.permute.xlu0 %416  ;;  %v706_v42 = vmul.f32 %v2544_v63, %v402_v38  ;;  %v2599_v43 = vpop.permute.xlu2 %601  ;;  %v969_v55 = vpack.c.bf16 %v2606_v47, %v2601_v44 }
  0xa2   : > { %v709_v45 = vmul.f32 %v2544_v63, %v417_v41  ;;  %v746_v40 = vmul.f32 %v2544_v63, %v2599_v43 }
  0xa3   : > { %v774_v53 = vmul.f32 1.442695, %v706_v42  ;;  %v2619_v54 = vpop.eup %2108 }
  0xa4   : > { %v780_v50 = vmul.f32 1.442695, %v709_v45  ;;  %1093 = vmatpush.bf16.msra.mxu0 %v970_v46  ;;  %2014 = vmatpush.bf16.msra.mxu1 %v970_v46  ;;  %v2623_v56 = vpop.eup %2110  ;;  %v854_v43 = vmul.f32 1.442695, %v746_v40 }
  0xa5   : > { %v968_v0 = vpack.c.bf16 %v2619_v54, %v2623_v56  ;;  %v2631_v1 = vpop.eup %2112 }
  0xa6   : > { %2114 = vpow2.f32 %v780_v50  ;;  %666 = vperm.xlu1 %2092, %v372_v49   ;;  %v364_v49 = vld [vmem:[%s3134_s0 + $0x188] sm:$0xff] }
  0xa7   : > { %661 = vperm.xlu0 %2091, %v371_v51   ;;  %651 = vperm.xlu2 %2093, %v369_v52   ;;  %2116 = vpow2.f32 %v774_v53 }
  0xa8   : > { %1094 = vmatpush.bf16.msra.mxu0 %v969_v55  ;;  %2015 = vmatpush.bf16.msra.mxu1 %v969_v55  ;;  %v397_v58 = vpop.permute.xlu1 %396  ;;  %2118 = vpow2.f32 %v776_v57 }
  0xa9   : > { %v705_v59 = vmul.f32 %v2544_v63, %v397_v58  ;;  %v392_v60 = vpop.permute.xlu0 %391  ;;  %v2626_v61 = vpop.permute.xlu2 %526 }
  0xaa   : > { %v704_v62 = vmul.f32 %v2544_v63, %v392_v60  ;;  %v731_v46 = vmul.f32 %v2544_v63, %v2626_v61 }
  0xab   : > { %v772_v3 = vmul.f32 1.442695, %v705_v59 }
  0xac   : > { %v2638_v5 = vpop.eup %2114  ;;  %v770_v7 = vmul.f32 1.442695, %v704_v62  ;;  %1095 = vmatpush.bf16.msra.mxu0 %v968_v0  ;;  %2016 = vmatpush.bf16.msra.mxu1 %v968_v0  ;;  %v824_v55 = vmul.f32 1.442695, %v731_v46 }
  0xad   : > { %2120 = vpow2.f32 %v772_v3  ;;  %v967_v10 = vpack.c.bf16 %v2638_v5, %v2631_v1  ;;  %v2650_v11 = vpop.eup %2116 }
  0xae   : > { %2122 = vpow2.f32 %v770_v7  ;;  %641 = vperm.xlu1 %2092, %v367_v4   ;;  %v2652_v15 = vpop.eup %2118 }
  0xaf   : > { %656 = vperm.xlu0 %2091, %v370_v8   ;;  %646 = vperm.xlu2 %2093, %v368_v9   ;;  %v966_v20 = vpack.c.bf16 %v2652_v15, %v2650_v11  ;;  %2124 = vpow2.f32 %v766_v12 }
  0xb0   : > { %1096 = vmatpush.bf16.msra.mxu0 %v967_v10  ;;  %2017 = vmatpush.bf16.msra.mxu1 %v967_v10  ;;  %v612_v14 = vpop.permute.xlu1 %611  ;;  %2126 = vpow2.f32 %v860_v13 }
  0xb1   : > { %v748_v16 = vmul.f32 %v2544_v63, %v612_v14  ;;  %v387_v17 = vpop.permute.xlu0 %386  ;;  %v2655_v18 = vpop.permute.xlu2 %511 }
  0xb2   : > { %v703_v19 = vmul.f32 %v2544_v63, %v387_v17 }
  0xb3   : > { %v2121_v21 = vpop.eup %2120  ;;  %v858_v22 = vmul.f32 1.442695, %v748_v16 }
  0xb4   : > { %v2123_v24 = vpop.eup %2122  ;;  %v768_v25 = vmul.f32 1.442695, %v703_v19  ;;  %1097 = vmatpush.bf16.msra.mxu0 %v966_v20  ;;  %2018 = vmatpush.bf16.msra.mxu1 %v966_v20 }
  0xb5   : > { %2128 = vpow2.f32 %v858_v22  ;;  %v965_v29 = vpack.c.bf16 %v2121_v21, %v2123_v24  ;;  %v2125_v32 = vpop.eup %2124 }
  0xb6   : > { %2130 = vpow2.f32 %v768_v25  ;;  %636 = vperm.xlu1 %2092, %v366_v23   ;;  %v2670_v35 = vpop.eup %2126 }
  0xb7   : > { %631 = vperm.xlu0 %2091, %v365_v26   ;;  %621 = vperm.xlu2 %2093, %v363_v27  }
  0xb8   : > { %1098 = vmatpush.bf16.msra.mxu0 %v965_v29  ;;  %2019 = vmatpush.bf16.msra.mxu1 %v965_v29  ;;  %v537_v31 = vpop.permute.xlu1 %536 }
  0xb9   : > { %v733_v33 = vmul.f32 %v2544_v63, %v537_v31  ;;  %v532_v34 = vpop.permute.xlu0 %531  ;;  %v587_v42 = vpop.permute.xlu2 %586 }
  0xba   : > { %v732_v36 = vmul.f32 %v2544_v63, %v532_v34  ;;  %v743_v22 = vmul.f32 %v2544_v63, %v587_v42 }
  0xbb   : > { %v2673_v38 = vpop.eup %2128  ;;  %v828_v41 = vmul.f32 1.442695, %v733_v33 }
  0xbc   : > { %v2131_v45 = vpop.eup %2130  ;;  %v826_v48 = vmul.f32 1.442695, %v732_v36  ;;  %v987_v50 = vpack.c.bf16 %v2670_v35, %v2673_v38  ;;  %v848_v27 = vmul.f32 1.442695, %v743_v22  ;;  %v1943_v22 = vld [vmem:[%s3136_s2 + $0x6c] sm:$0xf0] }
  0xbd   : > { %v894_v51 = vadd.f32 %v2131_v45, %v2125_v32  ;;  %2132 = vpow2.f32 %v828_v41  ;;  %v964_v52 = vpack.c.bf16 %v2131_v45, %v2125_v32 }
  0xbe   : > { %2134 = vpow2.f32 %v826_v48  ;;  %1150 = vmatpush.bf16.msra.mxu2 %v987_v50  ;;  %v1794_v48 = vld [vmem:[%s3136_s2 + $0x40] sm:$0xf] }
  0xbf   : > { %v895_v53 = vadd.f32 %v2123_v24, %v894_v51  ;;  %626 = vperm.xlu0 %2091, %v364_v49   ;;  %1099 = vmatpush.bf16.msra.mxu0 %v964_v52  ;;  %2136 = vpow2.f32 %v854_v43 }
  0xc0   : > { %2020 = vmatpush.bf16.msra.mxu1 %v964_v52  ;;  %v522_v57 = vpop.permute.xlu1 %521  ;;  %2138 = vpow2.f32 %v824_v55 }
  0xc1   : > { %v896_v58 = vadd.f32 %v2121_v21, %v895_v53  ;;  %v730_v59 = vmul.f32 %v2544_v63, %v522_v57  ;;  %v607_v60 = vpop.permute.xlu0 %606  ;;  %v572_v7 = vpop.permute.xlu2 %571 }
  0xc2   : > { %v747_v61 = vmul.f32 %v2544_v63, %v607_v60  ;;  %v740_v57 = vmul.f32 %v2544_v63, %v572_v7 }
  0xc3   : > { %v2686_v62 = vpop.eup %2132  ;;  %v897_v0 = vadd.f32 %v2650_v11, %v896_v58  ;;  %v822_v2 = vmul.f32 1.442695, %v730_v59 }
  0xc4   : > { %v2689_v3 = vpop.eup %2134  ;;  %v856_v4 = vmul.f32 1.442695, %v747_v61 }
  0xc5   : > { %v898_v6 = vadd.f32 %v2652_v15, %v897_v0  ;;  %2140 = vpow2.f32 %v822_v2  ;;  %v979_v8 = vpack.c.bf16 %v2686_v62, %v2689_v3  ;;  %v2695_v12 = vpop.eup %2136  ;;  %v842_v2 = vmul.f32 1.442695, %v740_v57 }
  0xc6   : > { %2142 = vpow2.f32 %v856_v4  ;;  %v2699_v16 = vpop.eup %2138 }
  0xc7   : > { %v899_v9 = vadd.f32 %v2631_v1, %v898_v6  ;;  %1121 = vmatpush.bf16.msrb.mxu1 %v979_v8  ;;  %v728_v1 = vmul.f32 %v2544_v63, %v2655_v18 }
  0xc8   : > { %v597_v10 = vpop.permute.xlu1 %596 }
  0xc9   : > { %v900_v11 = vadd.f32 %v2638_v5, %v899_v9  ;;  %v745_v13 = vmul.f32 %v2544_v63, %v597_v10  ;;  %v592_v14 = vpop.permute.xlu0 %591  ;;  %v497_v26 = vpop.permute.xlu2 %496 }
  0xca   : > { %v744_v15 = vmul.f32 %v2544_v63, %v592_v14  ;;  %v725_v60 = vmul.f32 %v2544_v63, %v497_v26 }
  0xcb   : > { %v2702_v17 = vpop.eup %2140  ;;  %v901_v19 = vadd.f32 %v2623_v56, %v900_v11  ;;  %v852_v20 = vmul.f32 1.442695, %v745_v13  ;;  %v818_v56 = vmul.f32 1.442695, %v728_v1 }
  0xcc   : > { %v2707_v21 = vpop.eup %2142  ;;  %v850_v5 = vmul.f32 1.442695, %v744_v15  ;;  %v978_v23 = vpack.c.bf16 %v2699_v16, %v2702_v17  ;;  %v812_v4 = vmul.f32 1.442695, %v725_v60  ;;  %v1931_v60 = vld [vmem:[%s3136_s2 + $0xc] sm:$0xf0] }
  0xcd   : > { %2144 = vpow2.f32 %v852_v20  ;;  %v986_v24 = vpack.c.bf16 %v2707_v21, %v2695_v12  ;;  %v902_v25 = vadd.f32 %v2619_v54, %v901_v19  ;;  %v1810_v20 = vld [vmem:[%s3136_s2 + $0x60] sm:$0xf] }
  0xce   : > { %2146 = vpow2.f32 %v850_v5  ;;  %1122 = vmatpush.bf16.msrb.mxu1 %v978_v23 }
  0xcf   : > { %1151 = vmatpush.bf16.msra.mxu2 %v986_v24  ;;  %v903_v18 = vadd.f32 %v2601_v44, %v902_v25  ;;  %2148 = vpow2.f32 %v818_v56  ;;  %v1811_v25 = vor.u32 %v1943_v22, %v1810_v20 }
  0xd0   : > { %v582_v29 = vpop.permute.xlu1 %581  ;;  %2150 = vpow2.f32 %v848_v27 }
  0xd1   : > { %v742_v31 = vmul.f32 %v2544_v63, %v582_v29  ;;  %v517_v32 = vpop.permute.xlu0 %516  ;;  %v904_v33 = vadd.f32 %v2606_v47, %v903_v18  ;;  %v482_v50 = vpop.permute.xlu2 %481 }
  0xd2   : > { %v729_v34 = vmul.f32 %v2544_v63, %v517_v32  ;;  %v722_v27 = vmul.f32 %v2544_v63, %v482_v50 }
  0xd3   : > { %v2719_v36 = vpop.eup %2144  ;;  %v846_v54 = vmul.f32 1.442695, %v742_v31  ;;  %v905_v40 = vadd.f32 %v2596_v39, %v904_v33  ;;  %v1939_v39 = vld [vmem:[%s3136_s2 + $0x4c] sm:$0xf0] }
  0xd4   : > { %v2722_v41 = vpop.eup %2146  ;;  %v820_v42 = vmul.f32 1.442695, %v729_v34 }
  0xd5   : > { %2152 = vpow2.f32 %v846_v54  ;;  %v985_v44 = vpack.c.bf16 %v2719_v36, %v2722_v41  ;;  %v906_v45 = vadd.f32 %v2594_v37, %v905_v40  ;;  %v2734_v49 = vpop.eup %2148  ;;  %v1795_v37 = vor.u32 %v1939_v39, %v1794_v48 }
  0xd6   : > { %2154 = vpow2.f32 %v820_v42  ;;  %v806_v42 = vmul.f32 1.442695, %v722_v27 }
  0xd7   : > { %1152 = vmatpush.bf16.msra.mxu2 %v985_v44  ;;  %v907_v47 = vadd.f32 %v2578_v28, %v906_v45  ;;  %v2740_v28 = vpop.eup %2150  ;;  %1110 = vmatmul.bf16.vlgmr.msra.gmra.mxu1 %v1795_v37 }
  0xd8   : > { %v507_v46 = vpop.permute.xlu1 %506 }
  0xd9   : > { %v727_v51 = vmul.f32 %v2544_v63, %v507_v46  ;;  %v502_v52 = vpop.permute.xlu0 %501  ;;  %v2738_v43 = vadd.f32 %v2583_v30, %v907_v47  ;;  %v557_v11 = vpop.permute.xlu2 %556 }
  0xda   : > { %v726_v53 = vmul.f32 %v2544_v63, %v502_v52  ;;  %v737_v32 = vmul.f32 %v2544_v63, %v557_v11 }
  0xdb   : > { %v2743_v55 = vpop.eup %2152  ;;  %v816_v58 = vmul.f32 1.442695, %v727_v51 }
  0xdc   : > { %v2746_v59 = vpop.eup %2154  ;;  %v814_v61 = vmul.f32 1.442695, %v726_v53  ;;  %v984_v0 = vpack.c.bf16 %v2740_v28, %v2743_v55  ;;  %v836_v44 = vmul.f32 1.442695, %v737_v32 }
  0xdd   : > { %2156 = vpow2.f32 %v816_v58  ;;  %v977_v30 = vpack.c.bf16 %v2746_v59, %v2734_v49  ;;  %v1762_v58 = vld [vmem:[%s3136_s2] sm:$0xf] }
  0xde   : > { %2158 = vpow2.f32 %v814_v61  ;;  %1153 = vmatpush.bf16.msra.mxu2 %v984_v0 }
  0xdf   : > { %1123 = vmatpush.bf16.msrb.mxu1 %v977_v30  ;;  %2160 = vpow2.f32 %v842_v2  ;;  %v1763_v2 = vor.u32 %v1931_v60, %v1762_v58  ;;  %v1770_v58 = vld [vmem:[%s3136_s2 + $0x8] sm:$0xf]  ;;  %v1932_v60 = vld [vmem:[%s3136_s2 + $0x14] sm:$0xf0] }
  0xe0   : > { %v492_v6 = vpop.permute.xlu1 %491  ;;  %2162 = vpow2.f32 %v812_v4 }
  0xe1   : > { %v724_v7 = vmul.f32 %v2544_v63, %v492_v6  ;;  %v577_v8 = vpop.permute.xlu0 %576  ;;  %v542_v54 = vpop.permute.xlu2 %541  ;;  %1100 = vmatmul.bf16.vlgmr.msra.gmra.mxu0 %v1763_v2 }
  0xe2   : > { %v741_v9 = vmul.f32 %v2544_v63, %v577_v8  ;;  %v734_v8 = vmul.f32 %v2544_v63, %v542_v54 }
  0xe3   : > { %v2755_v10 = vpop.eup %2156  ;;  %v810_v13 = vmul.f32 1.442695, %v724_v7 }
  0xe4   : > { %v2757_v14 = vpop.eup %2158  ;;  %v844_v15 = vmul.f32 1.442695, %v741_v9  ;;  %v830_v20 = vmul.f32 1.442695, %v734_v8 }
  0xe5   : > { %2164 = vpow2.f32 %v810_v13  ;;  %v976_v19 = vpack.c.bf16 %v2755_v10, %v2757_v14  ;;  %v2767_v5 = vpop.eup %2160 }
  0xe6   : > { %2166 = vpow2.f32 %v844_v15  ;;  %v2770_v56 = vpop.eup %2162 }
  0xe7   : > { %1124 = vmatpush.bf16.msrb.mxu1 %v976_v19 }
  0xe8   : > { %v567_v1 = vpop.permute.xlu1 %566  ;;  %1115 = vmatmul.bf16.gmra.mxu1 %v1811_v25 }
  0xe9   : > { %v739_v23 = vmul.f32 %v2544_v63, %v567_v1  ;;  %v562_v24 = vpop.permute.xlu0 %561  ;;  %v697_v53 = vpop.permute.xlu2 %696 }
  0xea   : > { %v738_v26 = vmul.f32 %v2544_v63, %v562_v24  ;;  %v765_v13 = vmul.f32 %v2544_v63, %v697_v53 }
  0xeb   : > { %v2773_v18 = vpop.eup %2164  ;;  %v840_v29 = vmul.f32 1.442695, %v739_v23 }
  0xec   : > { %v2776_v31 = vpop.eup %2166  ;;  %v838_v33 = vmul.f32 1.442695, %v738_v26  ;;  %v975_v34 = vpack.c.bf16 %v2770_v56, %v2773_v18  ;;  %v892_v22 = vmul.f32 1.442695, %v765_v13 }
  0xed   : > { %2168 = vpow2.f32 %v840_v29  ;;  %v983_v40 = vpack.c.bf16 %v2776_v31, %v2767_v5 }
  0xee   : > { %2170 = vpow2.f32 %v838_v33  ;;  %1125 = vmatpush.bf16.msrb.mxu1 %v975_v34 }
  0xef   : > { %1154 = vmatpush.bf16.msra.mxu2 %v983_v40  ;;  %2172 = vpow2.f32 %v806_v42  ;;  %v1778_v42 = vld [vmem:[%s3136_s2 + $0x20] sm:$0xf] }
  0xf0   : > { %v552_v45 = vpop.permute.xlu1 %551  ;;  %2174 = vpow2.f32 %v836_v44  ;;  %v1935_v44 = vld [vmem:[%s3136_s2 + $0x2c] sm:$0xf0] }
  0xf1   : > { %v736_v47 = vmul.f32 %v2544_v63, %v552_v45  ;;  %v487_v46 = vpop.permute.xlu0 %486  ;;  %v682_v24 = vpop.permute.xlu2 %681 }
  0xf2   : > { %v723_v48 = vmul.f32 %v2544_v63, %v487_v46 }
  0xf3   : > { %v2785_v39 = vpop.eup %2168  ;;  %v834_v50 = vmul.f32 1.442695, %v736_v47 }
  0xf4   : > { %v2787_v51 = vpop.eup %2170  ;;  %v808_v52 = vmul.f32 1.442695, %v723_v48  ;;  %v1779_v48 = vor.u32 %v1935_v44, %v1778_v42 }
  0xf5   : > { %2176 = vpow2.f32 %v834_v50  ;;  %v982_v37 = vpack.c.bf16 %v2785_v39, %v2787_v51  ;;  %v2797_v61 = vpop.eup %2172 }
  0xf6   : > { %2178 = vpow2.f32 %v808_v52  ;;  %v2800_v4 = vpop.eup %2174  ;;  %1105 = vmatmul.bf16.gmra.mxu0 %v1779_v48 }
  0xf7   : > { %1155 = vmatpush.bf16.msra.mxu2 %v982_v37 }
  0xf8   : > { %v477_v57 = vpop.permute.xlu1 %476 }
  0xf9   : > { %v721_v0 = vmul.f32 %v2544_v63, %v477_v57  ;;  %v472_v30 = vpop.permute.xlu0 %471  ;;  %v677_v53 = vpop.permute.xlu2 %676 }
  0xfa   : > { %v720_v6 = vmul.f32 %v2544_v63, %v472_v30 }
  0xfb   : > { %v2803_v7 = vpop.eup %2176  ;;  %v804_v9 = vmul.f32 1.442695, %v721_v0 }
  0xfc   : > { %v2806_v11 = vpop.eup %2178  ;;  %v802_v15 = vmul.f32 1.442695, %v720_v6  ;;  %v981_v19 = vpack.c.bf16 %v2800_v4, %v2803_v7  ;;  %v762_v6 = vmul.f32 %v2544_v63, %v682_v24  ;;  %v1929_v24 = vld [vmem:[%s3136_s2 + $0x4] sm:$0xf] }
  0xfd   : > { %2180 = vpow2.f32 %v804_v9  ;;  %v974_v1 = vpack.c.bf16 %v2806_v11, %v2797_v61  ;;  %v1771_v9 = vor.u32 %v1932_v60, %v1770_v58 }
  0xfe   : > { %2182 = vpow2.f32 %v802_v15  ;;  %1156 = vmatpush.bf16.msra.mxu2 %v981_v19  ;;  %v886_v15 = vmul.f32 1.442695, %v762_v6 }
  0xff   : > { %1126 = vmatpush.bf16.msrb.mxu1 %v974_v1  ;;  %2184 = vpow2.f32 %v830_v20  ;;  %v761_v20 = vmul.f32 %v2544_v63, %v677_v53 }
 0x100   : > { %v692_v23 = vpop.permute.xlu1 %691  ;;  %2186 = vpow2.f32 %v892_v22 }
 0x101   : > { %v764_v25 = vmul.f32 %v2544_v63, %v692_v23  ;;  %v547_v26 = vpop.permute.xlu0 %546  ;;  %v884_v42 = vmul.f32 1.442695, %v761_v20 }
 0x102   : > { %v735_v27 = vmul.f32 %v2544_v63, %v547_v26 }
 0x103   : > { %v2815_v29 = vpop.eup %2180  ;;  %v890_v32 = vmul.f32 1.442695, %v764_v25  ;;  %v1764_v25 = vld [vmem:[%s3136_s2 + $0x10] sm:$0xf0] }
 0x104   : > { %v2183_v33 = vpop.eup %2182  ;;  %v832_v34 = vmul.f32 1.442695, %v735_v27  ;;  %v1767_v44 = vor.u32 %v1929_v24, %v1764_v25 }
 0x105   : > { %2188 = vpow2.f32 %v890_v32  ;;  %v973_v54 = vpack.c.bf16 %v2815_v29, %v2183_v33  ;;  %v2824_v45 = vpop.eup %2184 }
 0x106   : > { %2190 = vpow2.f32 %v832_v34  ;;  %v2827_v50 = vpop.eup %2186  ;;  %v652_v34 = vpop.permute.xlu2 %651 }
 0x107   : > { %1127 = vmatpush.bf16.msrb.mxu1 %v973_v54 }
 0x108   : > { %v467_v40 = vpop.permute.xlu1 %466 }
 0x109   : > { %v719_v47 = vmul.f32 %v2544_v63, %v467_v40  ;;  %v462_v46 = vpop.permute.xlu0 %461 }
 0x10a   : > { %v718_v52 = vmul.f32 %v2544_v63, %v462_v46 }
 0x10b   : > { %v2830_v37 = vpop.eup %2188  ;;  %v800_v57 = vmul.f32 1.442695, %v719_v47 }
 0x10c   : > { %v2838_v0 = vpop.eup %2190  ;;  %v798_v30 = vmul.f32 1.442695, %v718_v52  ;;  %v995_v2 = vpack.c.bf16 %v2827_v50, %v2830_v37 }
 0x10d   : > { %2192 = vpow2.f32 %v800_v57  ;;  %v980_v8 = vpack.c.bf16 %v2838_v0, %v2824_v45 }
 0x10e   : > { %2194 = vpow2.f32 %v798_v30  ;;  %1179 = vmatpush.bf16.msrb.mxu0 %v995_v2  ;;  %2021 = vmatpush.bf16.msra.mxu3 %v995_v2  ;;  %v1786_v30 = vld [vmem:[%s3136_s2 + $0x28] sm:$0xf] }
 0x10f   : > { %1157 = vmatpush.bf16.msra.mxu2 %v980_v8  ;;  %2196 = vpow2.f32 %v886_v15  ;;  %v756_v8 = vmul.f32 %v2544_v63, %v652_v34 }
 0x110   : > { %v672_v13 = vpop.permute.xlu1 %671 }
 0x111   : > { %v760_v19 = vmul.f32 %v2544_v63, %v672_v13  ;;  %v687_v1 = vpop.permute.xlu0 %686 }
 0x112   : > { %v763_v22 = vmul.f32 %v2544_v63, %v687_v1  ;;  %1158 = vmatmul.bf16.vlgmr.msra.gmra.mxu2 %v1771_v9  ;;  %v647_v1 = vpop.permute.xlu2 %646 }
 0x113   : > { %v2193_v23 = vpop.eup %2192  ;;  %v882_v27 = vmul.f32 1.442695, %v760_v19 }
 0x114   : > { %v2195_v26 = vpop.eup %2194  ;;  %v888_v32 = vmul.f32 1.442695, %v763_v22 }
 0x115   : > { %v909_v54 = vadd.f32 %v2195_v26, %v2738_v43  ;;  %v972_v40 = vpack.c.bf16 %v2193_v23, %v2195_v26  ;;  %v2857_v58 = vpop.eup %2196 }
 0x116   : > { %2198 = vpow2.f32 %v888_v32 }
 0x117   : > { %v910_v47 = vadd.f32 %v2193_v23, %v909_v54  ;;  %1128 = vmatpush.bf16.msrb.mxu1 %v972_v40  ;;  %2200 = vpow2.f32 %v882_v27  ;;  %v874_v23 = vmul.f32 1.442695, %v756_v8  ;;  %v755_v27 = vmul.f32 %v2544_v63, %v647_v1  ;;  %v1780_v54 = vld [vmem:[%s3136_s2 + $0x30] sm:$0xf0] }
 0x118   : > { %v667_v46 = vpop.permute.xlu1 %666  ;;  %2202 = vpow2.f32 %v884_v42 }
 0x119   : > { %v911_v48 = vadd.f32 %v2183_v33, %v910_v47  ;;  %v759_v52 = vmul.f32 %v2544_v63, %v667_v46  ;;  %v662_v53 = vpop.permute.xlu0 %661  ;;  %v1936_v33 = vld [vmem:[%s3136_s2 + $0x34] sm:$0xf0]  ;;  %v872_v46 = vmul.f32 1.442695, %v755_v27 }
 0x11a   : > { %v758_v57 = vmul.f32 %v2544_v63, %v662_v53  ;;  %1129 = vmatmul.bf16.vlgmr.msrb.gmra.mxu1 %v1767_v44  ;;  %v1787_v15 = vor.u32 %v1936_v33, %v1786_v30  ;;  %v622_v30 = vpop.permute.xlu2 %621 }
 0x11b   : > { %v912_v43 = vadd.f32 %v2815_v29, %v911_v48  ;;  %v880_v60 = vmul.f32 1.442695, %v759_v52 }
 0x11c   : > { %v2866_v2 = vpop.eup %2198  ;;  %v878_v6 = vmul.f32 1.442695, %v758_v57 }
 0x11d   : > { %v913_v9 = vadd.f32 %v2797_v61, %v912_v43  ;;  %2204 = vpow2.f32 %v880_v60  ;;  %v994_v29 = vpack.c.bf16 %v2866_v2, %v2857_v58  ;;  %v2872_v13 = vpop.eup %2200 }
 0x11e   : > { %2206 = vpow2.f32 %v878_v6  ;;  %v2875_v20 = vpop.eup %2202 }
 0x11f   : > { %v914_v19 = vadd.f32 %v2806_v11, %v913_v9  ;;  %1180 = vmatpush.bf16.msrb.mxu0 %v994_v29  ;;  %2022 = vmatpush.bf16.msra.mxu3 %v994_v29  ;;  %v993_v26 = vpack.c.bf16 %v2875_v20, %v2872_v13  ;;  %2208 = vpow2.f32 %v874_v23 }
 0x120   : > { %v642_v22 = vpop.permute.xlu1 %641 }
 0x121   : > { %v915_v24 = vadd.f32 %v2773_v18, %v914_v19  ;;  %v754_v61 = vmul.f32 %v2544_v63, %v642_v22  ;;  %v657_v25 = vpop.permute.xlu0 %656  ;;  %v1933_v18 = vld [vmem:[%s3136_s2 + $0x24] sm:$0xf]  ;;  %v750_v19 = vmul.f32 %v2544_v63, %v622_v30 }
 0x122   : > { %v757_v32 = vmul.f32 %v2544_v63, %v657_v25  ;;  %1163 = vmatmul.bf16.gmra.mxu2 %v1787_v15  ;;  %v1783_v48 = vor.u32 %v1933_v18, %v1780_v54 }
 0x123   : > { %v2883_v11 = vpop.eup %2204  ;;  %v916_v34 = vadd.f32 %v2770_v56, %v915_v24  ;;  %1181 = vmatpush.bf16.msrb.mxu0 %v993_v26  ;;  %2023 = vmatpush.bf16.msra.mxu3 %v993_v26  ;;  %v870_v42 = vmul.f32 1.442695, %v754_v61  ;;  %v862_v25 = vmul.f32 1.442695, %v750_v19 }
 0x124   : > { %v2892_v40 = vpop.eup %2206  ;;  %v876_v44 = vmul.f32 1.442695, %v757_v32 }
 0x125   : > { %v917_v47 = vadd.f32 %v2757_v14, %v916_v34  ;;  %v992_v56 = vpack.c.bf16 %v2883_v11, %v2892_v40  ;;  %v2901_v33 = vpop.eup %2208 }
 0x126   : > { %2210 = vpow2.f32 %v876_v44 }
 0x127   : > { %v918_v52 = vadd.f32 %v2755_v10, %v917_v47  ;;  %1182 = vmatpush.bf16.msrb.mxu0 %v992_v56  ;;  %2024 = vmatpush.bf16.msra.mxu3 %v992_v56  ;;  %2212 = vpow2.f32 %v870_v42  ;;  %v1802_v10 = vld [vmem:[%s3136_s2 + $0x48] sm:$0xf]  ;;  %v1930_v56 = vld [vmem:[%s3136_s2 + $0xc] sm:$0xf] }
 0x128   : > { %v637_v53 = vpop.permute.xlu1 %636  ;;  %2214 = vpow2.f32 %v872_v46 }
 0x129   : > { %v919_v57 = vadd.f32 %v2734_v49, %v918_v52  ;;  %v753_v43 = vmul.f32 %v2544_v63, %v637_v53  ;;  %v632_v60 = vpop.permute.xlu0 %631  ;;  %v1940_v49 = vld [vmem:[%s3136_s2 + $0x54] sm:$0xf0]  ;;  %v1942_v53 = vld [vmem:[%s3136_s2 + $0x6c] sm:$0xf] }
 0x12a   : > { %v752_v14 = vmul.f32 %v2544_v63, %v632_v60  ;;  %1134 = vmatmul.bf16.gmra.mxu1 %v1783_v48  ;;  %v1803_v22 = vor.u32 %v1940_v49, %v1802_v10  ;;  %v1941_v49 = vld [vmem:[%s3136_s2 + $0x64] sm:$0xf] }
 0x12b   : > { %v920_v6 = vadd.f32 %v2746_v59, %v919_v57  ;;  %v868_v8 = vmul.f32 1.442695, %v753_v43 }
 0x12c   : > { %v2910_v9 = vpop.eup %2210  ;;  %v866_v29 = vmul.f32 1.442695, %v752_v14 }
 0x12d   : > { %v921_v15 = vadd.f32 %v2702_v17, %v920_v6  ;;  %2216 = vpow2.f32 %v868_v8  ;;  %v991_v59 = vpack.c.bf16 %v2910_v9, %v2901_v33  ;;  %v2916_v1 = vpop.eup %2212 }
 0x12e   : > { %2218 = vpow2.f32 %v866_v29  ;;  %v2919_v24 = vpop.eup %2214 }
 0x12f   : > { %v922_v23 = vadd.f32 %v2699_v16, %v921_v15  ;;  %1183 = vmatpush.bf16.msrb.mxu0 %v991_v59  ;;  %2025 = vmatpush.bf16.msra.mxu3 %v991_v59  ;;  %v990_v26 = vpack.c.bf16 %v2919_v24, %v2916_v1  ;;  %v1937_v16 = vld [vmem:[%s3136_s2 + $0x44] sm:$0xf]  ;;  %2220 = vpow2.f32 %v862_v25  ;;  %v1788_v59 = vld [vmem:[%s3136_s2 + $0x38] sm:$0xf0] }
 0x131   : > { %v923_v61 = vadd.f32 %v2689_v3, %v922_v23  ;;  %v627_v17 = vpop.permute.xlu0 %626  ;;  %v1796_v3 = vld [vmem:[%s3136_s2 + $0x50] sm:$0xf0] }
 0x132   : > { %v751_v27 = vmul.f32 %v2544_v63, %v627_v17  ;;  %1168 = vmatmul.bf16.gmra.mxu2 %v1803_v22  ;;  %v1799_v44 = vor.u32 %v1937_v16, %v1796_v3 }
 0x133   : > { %v2217_v32 = vpop.eup %2216  ;;  %v924_v34 = vadd.f32 %v2686_v62, %v923_v61  ;;  %1184 = vmatpush.bf16.msrb.mxu0 %v990_v26  ;;  %2026 = vmatpush.bf16.msra.mxu3 %v990_v26  ;;  %v1938_v26 = vld [vmem:[%s3136_s2 + $0x4c] sm:$0xf] }
 0x134   : > { %v2219_v18 = vpop.eup %2218  ;;  %v864_v54 = vmul.f32 1.442695, %v751_v27 }
 0x135   : > { %v925_v42 = vadd.f32 %v2824_v45, %v924_v34  ;;  %v989_v63 = vpack.c.bf16 %v2217_v32, %v2219_v18  ;;  %v2221_v46 = vpop.eup %2220  ;;  %v1772_v45 = vld [vmem:[%s3136_s2 + $0x18] sm:$0xf0] }
 0x136   : > { %2222 = vpow2.f32 %v864_v54  ;;  %v1775_v60 = vor.u32 %v1930_v56, %v1772_v45 }
 0x137   : > { %v926_v62 = vadd.f32 %v2838_v0, %v925_v42  ;;  %1185 = vmatpush.bf16.msrb.mxu0 %v989_v63  ;;  %2027 = vmatpush.bf16.msra.mxu3 %v989_v63  ;;  %v1818_v0 = vld [vmem:[%s3136_s2 + $0x68] sm:$0xf] }
 0x139   : > { %v927_v47 = vadd.f32 %v2803_v7, %v926_v62  ;;  %v1944_v7 = vld [vmem:[%s3136_s2 + $0x74] sm:$0xf0] }
 0x13a   : > { %1139 = vmatmul.bf16.gmra.mxu1 %v1799_v44  ;;  %v1819_v30 = vor.u32 %v1944_v7, %v1818_v0 }
 0x13b   : > { %v928_v48 = vadd.f32 %v2800_v4, %v927_v47  ;;  %v1820_v4 = vld [vmem:[%s3136_s2 + $0x78] sm:$0xf0] }
 0x13c   : > { %v2223_v52 = vpop.eup %2222  ;;  %v1823_v6 = vor.u32 %v1942_v53, %v1820_v4 }
 0x13d   : > { %v929_v57 = vadd.f32 %v2787_v51, %v928_v48  ;;  %v988_v43 = vpack.c.bf16 %v2223_v52, %v2221_v46  ;;  %v1812_v51 = vld [vmem:[%s3136_s2 + $0x70] sm:$0xf0] }
 0x13e   : > { %v1815_v29 = vor.u32 %v1941_v49, %v1812_v51 }
 0x13f   : > { %v930_v14 = vadd.f32 %v2785_v39, %v929_v57  ;;  %1186 = vmatpush.bf16.msrb.mxu0 %v988_v43  ;;  %2028 = vmatpush.bf16.msra.mxu3 %v988_v43 }
 0x141   : > { %v931_v8 = vadd.f32 %v2767_v5, %v930_v14 }
 0x142   : > { %1187 = vmatmul.bf16.vlgmr.msrb.gmra.mxu0 %v1775_v60  ;;  %1173 = vmatmul.bf16.gmra.mxu2 %v1819_v30 }
 0x143   : > { %v932_v10 = vadd.f32 %v2776_v31, %v931_v8  ;;  %1202 = vmatmul.bf16.vlgmr.msra.gmra.mxu3 %v1823_v6  ;;  %v1934_v31 = vld [vmem:[%s3136_s2 + $0x2c] sm:$0xf] }
 0x144   : > { %v1791_v23 = vor.u32 %v1934_v31, %v1788_v59 }
 0x145   : > { %v933_v39 = vadd.f32 %v2743_v55, %v932_v10 }
 0x147   : > { %v934_v15 = vadd.f32 %v2740_v28, %v933_v39 }
 0x149   : > { %v935_v5 = vadd.f32 %v2722_v41, %v934_v15 }
 0x14a   : > { %1144 = vmatmul.bf16.gmra.mxu1 %v1815_v29 }
 0x14b   : > { %v936_v19 = vadd.f32 %v2719_v36, %v935_v5 }
 0x14d   : > { %v937_v22 = vadd.f32 %v2695_v12, %v936_v19  ;;  %v1804_v12 = vld [vmem:[%s3136_s2 + $0x58] sm:$0xf0] }
 0x14f   : > { %v938_v55 = vadd.f32 %v2707_v21, %v937_v22  ;;  %v1807_v21 = vor.u32 %v1938_v26, %v1804_v12 }
 0x151   : > { %v939_v28 = vadd.f32 %v2673_v38, %v938_v55 }
 0x152   : > { %1192 = vmatmul.bf16.gmra.mxu0 %v1791_v23 }
 0x153   : > { %v940_v41 = vadd.f32 %v2670_v35, %v939_v28 }
 0x154   : > { %v2989_v16 = vpop.f32.mrf.mxu1 }
 0x155   : > { %v941_v61 = vadd.f32 %v2221_v46, %v940_v41 }
 0x157   : > { %v942_v36 = vadd.f32 %v2223_v52, %v941_v61 }
 0x159   : > { %v943_v25 = vadd.f32 %v2219_v18, %v942_v36 }
 0x15b   : > { %v944_v17 = vadd.f32 %v2217_v32, %v943_v25 }
 0x15c   : > { %v2991_v3 = vpop.f32.mrf.mxu1 }
 0x15d   : > { %v945_v27 = vadd.f32 %v2916_v1, %v944_v17 }
 0x15f   : > { %v946_v38 = vadd.f32 %v2919_v24, %v945_v27 }
 0x161   : > { %v947_v34 = vadd.f32 %v2901_v33, %v946_v38  ;;  %v1101_v33 = vpop.f32.mrf.mxu0 }
 0x162   : > { %1197 = vmatmul.bf16.gmra.mxu0 %v1807_v21 }
 0x163   : > { %v948_v35 = vadd.f32 %v2910_v9, %v947_v34 }
 0x165   : > { %v949_v32 = vadd.f32 %v2892_v40, %v948_v35  ;;  %v1116_v18 = vpop.f32.mrf.mxu1 }
 0x167   : > { %v950_v54 = vadd.f32 %v2883_v11, %v949_v32 }
 0x169   : > { %v951_v42 = vadd.f32 %v2872_v13, %v950_v54  ;;  %v1103_v46 = vpop.f32.mrf.mxu0 }
 0x16b   : > { %v952_v63 = vadd.f32 %v2875_v20, %v951_v42 }
 0x16d   : > { %v1118_v1 = vpop.f32.mrf.mxu1  ;;  %v953_v24 = vadd.f32 %v2857_v58, %v952_v63 }
 0x16f   : > { %v954_v9 = vadd.f32 %v2866_v2, %v953_v24 }
 0x171   : > { %v955_v56 = vadd.f32 %v2830_v37, %v954_v9 }
 0x173   : > { %v956_v11 = vadd.f32 %v2827_v50, %v955_v56  ;;  %v1106_v58 = vpop.f32.mrf.mxu0 }
 0x175   : > { %v957_v7 = vrot.slane %v956_v11, 4 }
 0x177   : > { %v958_v52 = vadd.f32 %v957_v7, %v956_v11 }
 0x179   : > { %v959_v2 = vrot.slane %v958_v52, 2 }
 0x17b   : > { %v960_v60 = vadd.f32 %v959_v2, %v958_v52  ;;  %v1108_v8 = vpop.f32.mrf.mxu0 }
 0x17d   : > { %v961_v14 = vrot.slane %v960_v60, 1 }
 0x17f   : > { %v962_v6 = vadd.f32 %v961_v14, %v960_v60 }
 0x181   : > { %2224 = vrcp.f32 %v962_v6 }
 0x187   : > { %v2225_v29 = vpop.eup %2224 }
 0x195   : > { %v1159_v44 = vpop.f32.mrf.mxu2 }
 0x197   : > { %v1130_v62 = vpop.f32.mrf.mxu1 }
 0x198   : > { %v1131_v40 = vadd.f32 %v1130_v62, %v1101_v33 }
 0x19a   : > { %v1160_v47 = vadd.f32 %v1159_v44, %v1131_v40 }
 0x19d   : > { %v1161_v48 = vpop.f32.mrf.mxu2 }
 0x19f   : > { %v1132_v45 = vpop.f32.mrf.mxu1 }
 0x1a0   : > { %v1133_v13 = vadd.f32 %v1132_v45, %v1103_v46 }
 0x1a2   : > { %v1162_v0 = vadd.f32 %v1161_v48, %v1133_v13 }
 0x1a5   : > { %v1164_v20 = vpop.f32.mrf.mxu2 }
 0x1a7   : > { %v1135_v53 = vpop.f32.mrf.mxu1 }
 0x1a8   : > { %v1136_v4 = vadd.f32 %v1135_v53, %v1106_v58 }
 0x1aa   : > { %v1165_v57 = vadd.f32 %v1164_v20, %v1136_v4 }
 0x1ad   : > { %v1166_v43 = vpop.f32.mrf.mxu2 }
 0x1af   : > { %v1137_v30 = vpop.f32.mrf.mxu1 }
 0x1b0   : > { %v1138_v32 = vadd.f32 %v1137_v30, %v1108_v8 }
 0x1b2   : > { %v1167_v24 = vadd.f32 %v1166_v43, %v1138_v32 }
 0x1b5   : > { %v1169_v37 = vpop.f32.mrf.mxu2 }
 0x1b7   : > { %v1140_v10 = vpop.f32.mrf.mxu1 }
 0x1bd   : > { %v1171_v50 = vpop.f32.mrf.mxu2 }
 0x1bf   : > { %v1142_v49 = vpop.f32.mrf.mxu1  ;;  %v1188_v51 = vpop.f32.mrf.mxu0 }
 0x1c0   : > { %v1189_v39 = vadd.f32 %v1188_v51, %v1160_v47  ;;  %v1143_v58 = vadd.f32 %v1142_v49, %v2991_v3  ;;  %v1946_v3 = vld [vmem:[%s3137_s3 + $0x8] sm:$0xff] }
 0x1c2   : > { %v1208_v15 = vmul.f32 %v2225_v29, %v1189_v39  ;;  %v1172_v4 = vadd.f32 %v1171_v50, %v1143_v58  ;;  %v1948_v50 = vld [vmem:[%s3137_s3 + $0x18] sm:$0xff] }
 0x1c4   : > { %v1216_v55 = vmul.f32 0.1, %v1208_v15 }
 0x1c5   : > { %v1174_v5 = vpop.f32.mrf.mxu2 }
 0x1c6   : > { %v1203_v19 = vpop.f32.mrf.mxu3  ;;  %v1224_v36 = vmax.f32 %v1208_v15, %v1216_v55 }
 0x1c7   : > { %v1145_v31 = vpop.f32.mrf.mxu1  ;;  %v1190_v59 = vpop.f32.mrf.mxu0 }
 0x1c8   : > { %v1146_v22 = vadd.f32 %v1145_v31, %v1116_v18  ;;  %v1191_v23 = vadd.f32 %v1190_v59, %v1162_v0 }
 0x1ca   : > { %v1209_v28 = vmul.f32 %v2225_v29, %v1191_v23  ;;  %v1175_v41 = vadd.f32 %v1174_v5, %v1146_v22 }
 0x1cc   : > { %v1217_v61 = vmul.f32 0.1, %v1209_v28  ;;  %v1204_v17 = vadd.f32 %v1203_v19, %v1175_v41 }
 0x1cd   : > { %v1176_v26 = vpop.f32.mrf.mxu2 }
 0x1ce   : > { %v1225_v25 = vmax.f32 %v1209_v28, %v1217_v61  ;;  %v1205_v35 = vpop.f32.mrf.mxu3  ;;  %v1214_v54 = vmul.f32 %v2225_v29, %v1204_v17 }
 0x1cf   : > { %v1147_v12 = vpop.f32.mrf.mxu1  ;;  %v1193_v27 = vpop.f32.mrf.mxu0 }
 0x1d0   : > { %v1148_v21 = vadd.f32 %v1147_v12, %v1118_v1  ;;  %v1194_v38 = vadd.f32 %v1193_v27, %v1165_v57  ;;  %v1240_v34 = vpack.c.bf16 %v1225_v25, %v1224_v36  ;;  %v1222_v33 = vmul.f32 0.1, %v1214_v54 }
 0x1d1   : > { %v1141_v1 = vadd.f32 %v1140_v10, %v2989_v16  ;;  %v1947_v10 = vld [vmem:[%s3137_s3 + $0x10] sm:$0xff] }
 0x1d2   : > { %v1210_v42 = vmul.f32 %v2225_v29, %v1194_v38  ;;  %v1177_v63 = vadd.f32 %v1176_v26, %v1148_v21  ;;  %v1230_v47 = vmax.f32 %v1214_v54, %v1222_v33  ;;  %v1951_v33 = vld [vmem:[%s3138_s4 + $0x10] sm:$0xff] }
 0x1d3   : > { %v1170_v20 = vadd.f32 %v1169_v37, %v1141_v1  ;;  %v1945_v37 = vld [vmem:[%s3137_s3] sm:$0xff] }
 0x1d4   : > { %v1206_v18 = vadd.f32 %v1205_v35, %v1177_v63  ;;  %v1218_v56 = vmul.f32 0.1, %v1210_v42  ;;  %v1949_v63 = vld [vmem:[%s3138_s4] sm:$0xff] }
 0x1d6   : > { %v1215_v44 = vmul.f32 %v2225_v29, %v1206_v18  ;;  %v1226_v13 = vmax.f32 %v1210_v42, %v1218_v56  ;;  %v1952_v18 = vld [vmem:[%s3138_s4 + $0x18] sm:$0xff] }
 0x1d7   : > { %v1195_v9 = vpop.f32.mrf.mxu0 }
 0x1d8   : > { %v1223_v62 = vmul.f32 0.1, %v1215_v44  ;;  %v1196_v40 = vadd.f32 %v1195_v9, %v1167_v24  ;;  %v1950_v24 = vld [vmem:[%s3138_s4 + $0x8] sm:$0xff] }
 0x1da   : > { %v1231_v46 = vmax.f32 %v1215_v44, %v1223_v62  ;;  %v1211_v48 = vmul.f32 %v2225_v29, %v1196_v40 }
 0x1dc   : > { %v1243_v11 = vpack.c.bf16 %v1231_v46, %v1230_v47  ;;  %v1219_v45 = vmul.f32 0.1, %v1211_v48 }
 0x1de   : > { %v1227_v0 = vmax.f32 %v1211_v48, %v1219_v45  ;;  %1281 = vmatpush.bf16.msra.mxu0 %v1243_v11 }
 0x1df   : > { %v1198_v7 = vpop.f32.mrf.mxu0 }
 0x1e0   : > { %v1241_v52 = vpack.c.bf16 %v1227_v0, %v1226_v13  ;;  %v1199_v53 = vadd.f32 %v1198_v7, %v1170_v20 }
 0x1e2   : > { %v1212_v57 = vmul.f32 %v2225_v29, %v1199_v53 }
 0x1e4   : > { %v1220_v60 = vmul.f32 0.1, %v1212_v57 }
 0x1e6   : > { %v1228_v6 = vmax.f32 %v1212_v57, %v1220_v60 }
 0x1e7   : > { %v1200_v2 = vpop.f32.mrf.mxu0 }
 0x1e8   : > { %v1201_v43 = vadd.f32 %v1200_v2, %v1172_v4 }
 0x1ea   : > { %v1213_v30 = vmul.f32 %v2225_v29, %v1201_v43 }
 0x1ec   : > { %v1221_v14 = vmul.f32 0.1, %v1213_v30 }
 0x1ee   : > { %v1229_v16 = vmax.f32 %v1213_v30, %v1221_v14 }
 0x1f0   : > { %v1242_v8 = vpack.c.bf16 %v1229_v16, %v1228_v6 }
 0x1f2   : > { %1282 = vmatpush.bf16.msra.mxu0 %v1242_v8 }
 0x1f6   : > { %1283 = vmatpush.bf16.msra.mxu0 %v1241_v52 }
 0x1fa   : > { %1284 = vmatpush.bf16.msra.mxu0 %v1240_v34 }
 0x1fd   : > { %1840 = vmatmul.msk.bf16.vlgmr.msra.gmra.mxu0 %vm1264_vm4, %v1945_v37  ;;  %v1953_v37 = vld [vmem:[%s3139_s5] sm:$0xff] }
 0x20d   : > { %1841 = vmatmul.msk.bf16.gmra.mxu0 %vm1264_vm4, %v1946_v3  ;;  %v1954_v3 = vld [vmem:[%s3139_s5 + $0x8] sm:$0xff] }
 0x21d   : > { %1842 = vmatmul.msk.bf16.gmra.mxu0 %vm1264_vm4, %v1947_v10  ;;  %v1955_v10 = vld [vmem:[%s3139_s5 + $0x10] sm:$0xff] }
 0x22d   : > { %1843 = vmatmul.msk.bf16.gmra.mxu0 %vm1264_vm4, %v1948_v50  ;;  %v1956_v50 = vld [vmem:[%s3139_s5 + $0x18] sm:$0xff] }
 0x27a   : > { %v1286_v49 = vpop.f32.mrf.mxu0 }
 0x27b   : > { %v1306_v38 = vmul.f32 0.1, %v1286_v49 }
 0x27d   : > { %v1314_v54 = vmax.f32 %v1286_v49, %v1306_v38 }
 0x282   : > { %v1288_v51 = vpop.f32.mrf.mxu0 }
 0x283   : > { %v1307_v12 = vmul.f32 0.1, %v1288_v51 }
 0x285   : > { %v1315_v35 = vmax.f32 %v1288_v51, %v1307_v12 }
 0x287   : > { %v1330_v42 = vpack.c.bf16 %v1315_v35, %v1314_v54 }
 0x28a   : > { %v1291_v39 = vpop.f32.mrf.mxu0 }
 0x28b   : > { %v1308_v17 = vmul.f32 0.1, %v1291_v39 }
 0x28d   : > { %v1316_v34 = vmax.f32 %v1291_v39, %v1308_v17 }
 0x292   : > { %v1293_v29 = vpop.f32.mrf.mxu0 }
 0x293   : > { %v1309_v61 = vmul.f32 0.1, %v1293_v29 }
 0x295   : > { %v1317_v27 = vmax.f32 %v1293_v29, %v1309_v61 }
 0x297   : > { %v1331_v32 = vpack.c.bf16 %v1317_v27, %v1316_v34 }
 0x29a   : > { %v1296_v15 = vpop.f32.mrf.mxu0 }
 0x29b   : > { %v1310_v55 = vmul.f32 0.1, %v1296_v15 }
 0x29d   : > { %v1318_v26 = vmax.f32 %v1296_v15, %v1310_v55 }
 0x2a2   : > { %v1298_v5 = vpop.f32.mrf.mxu0 }
 0x2a3   : > { %v1311_v22 = vmul.f32 0.1, %v1298_v5 }
 0x2a5   : > { %v1319_v36 = vmax.f32 %v1298_v5, %v1311_v22 }
 0x2a7   : > { %v1332_v21 = vpack.c.bf16 %v1319_v36, %v1318_v26 }
 0x2aa   : > { %v1301_v19 = vpop.f32.mrf.mxu0 }
 0x2ab   : > { %v1312_v31 = vmul.f32 0.1, %v1301_v19 }
 0x2ad   : > { %v1320_v28 = vmax.f32 %v1301_v19, %v1312_v31 }
 0x2b2   : > { %v1303_v59 = vpop.f32.mrf.mxu0 }
 0x2b3   : > { %v1313_v23 = vmul.f32 0.1, %v1303_v59 }
 0x2b5   : > { %v1321_v41 = vmax.f32 %v1303_v59, %v1313_v23 }
 0x2b7   : > { %v1333_v25 = vpack.c.bf16 %v1321_v41, %v1320_v28 }
 0x2b9   : > { %1370 = vmatpush.bf16.msra.mxu1 %v1333_v25  ;;  %2029 = vmatpush.bf16.msrb.mxu2 %v1333_v25 }
 0x2bd   : > { %1371 = vmatpush.bf16.msra.mxu1 %v1332_v21  ;;  %2030 = vmatpush.bf16.msrb.mxu2 %v1332_v21 }
 0x2c1   : > { %1372 = vmatpush.bf16.msra.mxu1 %v1331_v32  ;;  %2031 = vmatpush.bf16.msrb.mxu2 %v1331_v32 }
 0x2c5   : > { %1373 = vmatpush.bf16.msra.mxu1 %v1330_v42  ;;  %2032 = vmatpush.bf16.msrb.mxu2 %v1330_v42 }
 0x2c8   : > { %1860 = vmatmul.msk.bf16.vlgmr.msra.gmra.mxu1 %vm1264_vm4, %v1949_v63  ;;  %1863 = vmatmul.msk.bf16.vlgmr.msrb.gmra.mxu2 %vm1264_vm4, %v1952_v18  ;;  %v1957_v63 = vld [vmem:[%s3140_s6] sm:$0xff]  ;;  %v1958_v18 = vld [vmem:[%s3140_s6 + $0x8] sm:$0xff] }
 0x2d8   : > { %1861 = vmatmul.msk.bf16.gmra.mxu1 %vm1264_vm4, %v1950_v24  ;;  %v1959_v24 = vld [vmem:[%s3140_s6 + $0x10] sm:$0xff] }
 0x2e8   : > { %1862 = vmatmul.msk.bf16.gmra.mxu1 %vm1264_vm4, %v1951_v33  ;;  %v1960_v33 = vld [vmem:[%s3140_s6 + $0x18] sm:$0xff] }
 0x345   : > { %v1375_v44 = vpop.f32.mrf.mxu1 }
 0x346   : > { %v1395_v60 = vmul.f32 0.1, %v1375_v44 }
 0x348   : > { %v1403_v16 = vmax.f32 %v1375_v44, %v1395_v60  ;;  %v1961_v44 = vld [vmem:[%s3140_s6 + $0x20] sm:$0xff] }
 0x34b   : > { %v1390_v9 = vpop.f32.mrf.mxu2 }
 0x34c   : > { %v1401_v40 = vmul.f32 0.1, %v1390_v9 }
 0x34d   : > { %v1377_v62 = vpop.f32.mrf.mxu1 }
 0x34e   : > { %v1409_v56 = vmax.f32 %v1390_v9, %v1401_v40  ;;  %v1396_v57 = vmul.f32 0.1, %v1377_v62  ;;  %v1962_v9 = vld [vmem:[%s3140_s6 + $0x28] sm:$0xff]  ;;  %v1964_v40 = vld [vmem:[%s3140_s6 + $0x38] sm:$0xff] }
 0x350   : > { %v1404_v14 = vmax.f32 %v1377_v62, %v1396_v57  ;;  %v1963_v62 = vld [vmem:[%s3140_s6 + $0x30] sm:$0xff] }
 0x352   : > { %v1419_v8 = vpack.c.bf16 %v1404_v14, %v1403_v16 }
 0x353   : > { %v1392_v47 = vpop.f32.mrf.mxu2 }
 0x354   : > { %v1402_v46 = vmul.f32 0.1, %v1392_v47 }
 0x355   : > { %v1380_v48 = vpop.f32.mrf.mxu1 }
 0x356   : > { %v1410_v1 = vmax.f32 %v1392_v47, %v1402_v46  ;;  %v1397_v58 = vmul.f32 0.1, %v1380_v48 }
 0x358   : > { %v1422_v11 = vpack.c.bf16 %v1410_v1, %v1409_v56  ;;  %v1405_v30 = vmax.f32 %v1380_v48, %v1397_v58 }
 0x35a   : > { %1459 = vmatpush.bf16.msra.mxu2 %v1422_v11 }
 0x35d   : > { %v1382_v45 = vpop.f32.mrf.mxu1 }
 0x35e   : > { %v1398_v20 = vmul.f32 0.1, %v1382_v45 }
 0x360   : > { %v1406_v2 = vmax.f32 %v1382_v45, %v1398_v20 }
 0x362   : > { %v1420_v6 = vpack.c.bf16 %v1406_v2, %v1405_v30 }
 0x365   : > { %v1385_v13 = vpop.f32.mrf.mxu1 }
 0x366   : > { %v1399_v0 = vmul.f32 0.1, %v1385_v13 }
 0x368   : > { %v1407_v53 = vmax.f32 %v1385_v13, %v1399_v0 }
 0x36d   : > { %v1387_v7 = vpop.f32.mrf.mxu1 }
 0x36e   : > { %v1400_v52 = vmul.f32 0.1, %v1387_v7 }
 0x370   : > { %v1408_v4 = vmax.f32 %v1387_v7, %v1400_v52 }
 0x372   : > { %v1421_v43 = vpack.c.bf16 %v1408_v4, %v1407_v53 }
 0x374   : > { %1460 = vmatpush.bf16.msra.mxu2 %v1421_v43 }
 0x378   : > { %1461 = vmatpush.bf16.msra.mxu2 %v1420_v6 }
 0x37c   : > { %1462 = vmatpush.bf16.msra.mxu2 %v1419_v8 }
 0x37f   : > { %1880 = vmatmul.msk.bf16.vlgmr.msra.gmra.mxu2 %vm1264_vm4, %v1953_v37 }
 0x38f   : > { %1881 = vmatmul.msk.bf16.gmra.mxu2 %vm1264_vm4, %v1954_v3 }
 0x39f   : > { %1882 = vmatmul.msk.bf16.gmra.mxu2 %vm1264_vm4, %v1955_v10 }
 0x3af   : > { %1883 = vmatmul.msk.bf16.gmra.mxu2 %vm1264_vm4, %v1956_v50 }
 0x402   : > { %v1464_v49 = vpop.f32.mrf.mxu2 }
 0x403   : > { %v1484_v38 = vmul.f32 0.1, %v1464_v49 }
 0x405   : > { %v1492_v54 = vmax.f32 %v1464_v49, %v1484_v38 }
 0x40a   : > { %v1466_v51 = vpop.f32.mrf.mxu2 }
 0x40b   : > { %v1485_v12 = vmul.f32 0.1, %v1466_v51 }
 0x40d   : > { %v1493_v35 = vmax.f32 %v1466_v51, %v1485_v12 }
 0x40f   : > { %v1516_v42 = vpack.c.bf16 %v1493_v35, %v1492_v54 }
 0x412   : > { %v1469_v39 = vpop.f32.mrf.mxu2 }
 0x413   : > { %v1486_v17 = vmul.f32 0.1, %v1469_v39 }
 0x415   : > { %v1494_v34 = vmax.f32 %v1469_v39, %v1486_v17 }
 0x41a   : > { %v1471_v29 = vpop.f32.mrf.mxu2 }
 0x41b   : > { %v1487_v61 = vmul.f32 0.1, %v1471_v29 }
 0x41d   : > { %v1495_v27 = vmax.f32 %v1471_v29, %v1487_v61 }
 0x41f   : > { %v1517_v32 = vpack.c.bf16 %v1495_v27, %v1494_v34 }
 0x422   : > { %v1474_v15 = vpop.f32.mrf.mxu2 }
 0x423   : > { %v1488_v55 = vmul.f32 0.1, %v1474_v15 }
 0x425   : > { %v1496_v26 = vmax.f32 %v1474_v15, %v1488_v55 }
 0x42a   : > { %v1476_v5 = vpop.f32.mrf.mxu2 }
 0x42b   : > { %v1489_v22 = vmul.f32 0.1, %v1476_v5 }
 0x42d   : > { %v1497_v36 = vmax.f32 %v1476_v5, %v1489_v22 }
 0x42f   : > { %v1518_v21 = vpack.c.bf16 %v1497_v36, %v1496_v26 }
 0x432   : > { %v1479_v19 = vpop.f32.mrf.mxu2 }
 0x433   : > { %v1490_v31 = vmul.f32 0.1, %v1479_v19 }
 0x435   : > { %v1498_v28 = vmax.f32 %v1479_v19, %v1490_v31 }
 0x43a   : > { %v1481_v59 = vpop.f32.mrf.mxu2 }
 0x43b   : > { %v1491_v23 = vmul.f32 0.1, %v1481_v59 }
 0x43d   : > { %v1499_v41 = vmax.f32 %v1481_v59, %v1491_v23 }
 0x43f   : > { %v1519_v25 = vpack.c.bf16 %v1499_v41, %v1498_v28 }
 0x441   : > { %1588 = vmatpush.bf16.msrb.mxu3 %v1519_v25 }
 0x445   : > { %1589 = vmatpush.bf16.msrb.mxu3 %v1518_v21 }
 0x449   : > { %1590 = vmatpush.bf16.msrb.mxu3 %v1517_v32 }
 0x44d   : > { %1591 = vmatpush.bf16.msrb.mxu3 %v1516_v42 }
 0x450   : > { %1916 = vmatmul.msk.bf16.vlgmr.msrb.gmra.mxu3 %vm1264_vm4, %v1957_v63 }
 0x460   : > { %1917 = vmatmul.msk.bf16.gmra.mxu3 %vm1264_vm4, %v1958_v18 }
 0x470   : > { %1918 = vmatmul.msk.bf16.gmra.mxu3 %vm1264_vm4, %v1959_v24 }
 0x480   : > { %1919 = vmatmul.msk.bf16.gmra.mxu3 %vm1264_vm4, %v1960_v33 }
 0x490   : > { %1920 = vmatmul.msk.bf16.gmra.mxu3 %vm1264_vm4, %v1961_v44 }
 0x4a0   : > { %1921 = vmatmul.msk.bf16.gmra.mxu3 %vm1264_vm4, %v1962_v9 }
 0x4b0   : > { %1922 = vmatmul.msk.bf16.gmra.mxu3 %vm1264_vm4, %v1963_v62 }
 0x4c0   : > { %1923 = vmatmul.msk.bf16.gmra.mxu3 %vm1264_vm4, %v1964_v40 }
 0x4d3   : > { %v1593_v47 = vpop.f32.mrf.mxu3 }
 0x4db   : > { %v1595_v56 = vpop.f32.mrf.mxu3 }
 0x4dc   : > { %v1969_v46 = vpack.c.bf16 %v1595_v56, %v1593_v47 }
 0x4de   : > { %1970 = vst [vmem:[%s3085_s20] sm:$0xff] %v1969_v46  }
 0x4e3   : > { %v1598_v48 = vpop.f32.mrf.mxu3 }
 0x4eb   : > { %v1600_v1 = vpop.f32.mrf.mxu3 }
 0x4ec   : > { %v1974_v11 = vpack.c.bf16 %v1600_v1, %v1598_v48 }
 0x4ee   : > { %2006 = vst [vmem:[%s3085_s20 + $0x8] sm:$0xff] %v1974_v11  }
 0x4f3   : > { %v1603_v45 = vpop.f32.mrf.mxu3 }
 0x4fb   : > { %v1605_v13 = vpop.f32.mrf.mxu3 }
 0x4fc   : > { %v1979_v0 = vpack.c.bf16 %v1605_v13, %v1603_v45 }
 0x4fe   : > { %2007 = vst [vmem:[%s3085_s20 + $0x10] sm:$0xff] %v1979_v0  }
 0x503   : > { %v1608_v7 = vpop.f32.mrf.mxu3 }
 0x50b   : > { %v1610_v20 = vpop.f32.mrf.mxu3 }
 0x50c   : > { %v1984_v52 = vpack.c.bf16 %v1610_v20, %v1608_v7 }
 0x50e   : > { %2008 = vst [vmem:[%s3085_s20 + $0x18] sm:$0xff] %v1984_v52  }
 0x513   : > { %v1613_v58 = vpop.f32.mrf.mxu3 }
 0x51b   : > { %v1615_v53 = vpop.f32.mrf.mxu3 }
 0x51c   : > { %v1989_v4 = vpack.c.bf16 %v1615_v53, %v1613_v58 }
 0x51e   : > { %2009 = vst [vmem:[%s3085_s20 + $0x20] sm:$0xff] %v1989_v4  }
 0x523   : > { %v1618_v57 = vpop.f32.mrf.mxu3 }
 0x52b   : > { %v1620_v2 = vpop.f32.mrf.mxu3 }
 0x52c   : > { %v1994_v43 = vpack.c.bf16 %v1620_v2, %v1618_v57 }
 0x52e   : > { %2010 = vst [vmem:[%s3085_s20 + $0x28] sm:$0xff] %v1994_v43  }
 0x533   : > { %v1623_v60 = vpop.f32.mrf.mxu3 }
 0x53b   : > { %v1625_v30 = vpop.f32.mrf.mxu3 }
 0x53c   : > { %v1999_v14 = vpack.c.bf16 %v1625_v30, %v1623_v60 }
 0x53e   : > { %2011 = vst [vmem:[%s3085_s20 + $0x30] sm:$0xff] %v1999_v14  }
 0x543   : > { %v1628_v6 = vpop.f32.mrf.mxu3 }
 0x54b   : > { %v1630_v16 = vpop.f32.mrf.mxu3 }
 0x54c   : > { %v2004_v8 = vpack.c.bf16 %v1630_v16, %v1628_v6 }
 0x54e   : > { %2012 = vst [vmem:[%s3085_s20 + $0x38] sm:$0xff] %v2004_v8  }
 0x54f   : > { %2253 = shalt.err (!%p2250_p5)
}
 0x550   : > { %s2307_s18 = smov 64   ;;  %s2308_s20 = smov 4  }
 0x551   : > { %2033 = dma.vmem_to_hbm [thread:$0]  (%p2389_p4), %s1680_s30, 1024, %s1682_s8, %s1666_s10, %s2307_s18, %s2307_s18, %s2308_s20  }
 0x552 PF: > { %p2039_p6 = scmp.ge.s32.totalorder %s2304_s29, 2  ;;  %s1696_s22 = sand.u32 1, %s2284_s24  }
 0x553   : > { %s1697_s23 = scalar_lea.sflag [#allocation3], %s1696_s22 }
 0x554   : > { %p2036_p7 = pnand %p2039_p6, %p2396_p8 }
 0x556   : > { %p2037_p9 = pneg %p2036_p7 }
 0x558   : > { %2279 = dma.done.wait (%p2037_p9), %s1697_s23, 1024  }
 0x559   : > { %2281 = vsyncadd (%p2037_p9), %s1697_s23, 4294966272  ;;  %s20_s29 = sadd.s32 1, %s2304_s29   ;;  %s3144_s24 = smov %s2288_s25 }
 0x55a   : > { %p17_p10 = scmp.ge.s32.totalorder %s20_s29, 4   ;;  %s3145_s25 = smov %s2292_s26 }
 0x55b   : > { %s3146_s26 = smov %s2402_s14  ;;  %s3147_s27 = smov %s2300_s28 }
 0x55c   : > { %s3148_s28 = smov %s3150_s9  ;;  %19 = sbr.rel (!%p17_p10) target bundleno = 4 (0x4), region = 83 }
 0x561   :  { %1703 = vsyncpa [#allocation3], 1 }
 0x562   :  { %1705 = vsyncpa [#allocation3 + $0x1], 1 }

</bundles_post_ra>
